<compile_context>
chip_gen: v5e
topology: v5e:2x2
jax: 0.10.0
libtpu: 0.0.40
codegen_flags: <defaults>
</compile_context>

<pallas_src>
import functools

import jax
import jax.numpy as jnp
from jax import lax
from jax.experimental import pallas as pl
from jax.experimental.pallas import tpu as pltpu

LN_EPS = 1e-5
_VMEM_LIMIT = 32 * 1024 * 1024  # safe on v5e/v6e/v7x


def _pick_tile(dim, target, align):
    """Largest tile <= target that divides `dim` and is a multiple of `align`,
    otherwise the full dim (full-extent blocks are always legal)."""
    t = min(target, dim)
    t = (t // align) * align
    while t >= align:
        if dim % t == 0:
            return t
        t -= align
    return dim


# ---------------------------------------------------------------------------
# Kernel 1: fused LayerNorm + projection GEMM   (qkv_bias=False -> no bias)
# ---------------------------------------------------------------------------
def _ln_matmul_kernel(x_ref, g_ref, b_ref, w_ref, o_ref):
    x = x_ref[...].astype(jnp.float32)                       # (tm, Cin)
    mu = jnp.mean(x, axis=-1, keepdims=True)
    xc = x - mu
    var = jnp.mean(xc * xc, axis=-1, keepdims=True)
    xn = xc * lax.rsqrt(var + LN_EPS) * g_ref[...] + b_ref[...]
    o_ref[...] = jnp.dot(
        xn.astype(w_ref.dtype), w_ref[...],
        preferred_element_type=jnp.float32).astype(o_ref.dtype)


def layernorm_matmul(x, gamma, beta, w, *, tm_target=256, tn_target=512):
    """LayerNorm(x) @ w.  x: (M, Cin), w: (Cin, Cout) -> (M, Cout)."""
    M, Cin = x.shape
    Cout = w.shape[1]
    tm = _pick_tile(M, tm_target, 8)
    tn = _pick_tile(Cout, tn_target, 128)
    return pl.pallas_call(
        _ln_matmul_kernel,
        out_shape=jax.ShapeDtypeStruct((M, Cout), x.dtype),
        grid_spec=pltpu.PrefetchScalarGridSpec(
            num_scalar_prefetch=0,
            grid=(M // tm, Cout // tn),
            in_specs=[
                pl.BlockSpec((tm, Cin), lambda i, j: (i, 0)),
                pl.BlockSpec((1, Cin), lambda i, j: (0, 0)),
                pl.BlockSpec((1, Cin), lambda i, j: (0, 0)),
                pl.BlockSpec((Cin, tn), lambda i, j: (0, j)),
            ],
            out_specs=pl.BlockSpec((tm, tn), lambda i, j: (i, j)),
        ),
        compiler_params=pltpu.CompilerParams(
            dimension_semantics=("parallel", "parallel"),
            vmem_limit_bytes=_VMEM_LIMIT),
    )(x, gamma.reshape(1, Cin), beta.reshape(1, Cin), w)


# ---------------------------------------------------------------------------
# Kernel 2: multi-head attention (all heads per batch step) + out-proj + res
# ---------------------------------------------------------------------------
def _attn_kernel(q_ref, kv_ref, res_ref, wo_ref, bo_ref, o_ref, *,
                 num_heads, head_dim, scale):
    # TODO(synk): mask path (masked_fill -inf) and attn/proj dropout omitted
    # (mask=None and eval mode in this configuration).
    C = num_heads * head_dim
    q = q_ref[0]                                   # (N, C)
    kv = kv_ref[0]                                 # (S, 2C): [K | V]
    wo = wo_ref[...]                               # (C, Cout)
    acc = res_ref[0].astype(jnp.float32) + bo_ref[...].astype(jnp.float32)

    for h in range(num_heads):                     # static unroll over heads
        lo, hi = h * head_dim, (h + 1) * head_dim
        qh = q[:, lo:hi]                           # (N, D)
        kh = kv[:, lo:hi]                          # (S, D)
        vh = kv[:, C + lo:C + hi]                  # (S, D)
        # q @ k^T without an explicit transpose: contract the last axes.
        s = lax.dot_general(qh, kh, (((1,), (1,)), ((), ())),
                            preferred_element_type=jnp.float32) * scale
        s = s - jnp.max(s, axis=-1, keepdims=True)
        p = jnp.exp(s)
        p = p * pl.reciprocal(jnp.sum(p, axis=-1, keepdims=True), approx=True)
        oh = jnp.dot(p.astype(vh.dtype), vh,
                     preferred_element_type=jnp.float32)          # (N, D)
        # Fused output projection: concat over heads == sum_h oh @ Wo[hD:(h+1)D]
        acc = acc + jnp.dot(oh.astype(wo.dtype), wo[lo:hi, :],
                            preferred_element_type=jnp.float32)

    o_ref[0] = acc.astype(o_ref.dtype)             # lane-dense (N, C) store


def attention_block(q_proj, kv_proj, residual, wo, bo, *, num_heads):
    """q_proj: (B, N, C), kv_proj: (B, S, 2C), residual: (B, N, C)."""
    B, N, C = q_proj.shape
    S = kv_proj.shape[1]
    Cout = wo.shape[1]
    D = C // num_heads
    kern = functools.partial(_attn_kernel, num_heads=num_heads,
                             head_dim=D, scale=D ** (-0.5))
    # TODO(synk): for very long key sequences, tile S with an online-softmax
    # accumulator (flash style) to bound VMEM; not needed at GroupViT sizes.
    return pl.pallas_call(
        kern,
        out_shape=jax.ShapeDtypeStruct((B, N, Cout), q_proj.dtype),
        grid_spec=pltpu.PrefetchScalarGridSpec(
            num_scalar_prefetch=0,
            grid=(B,),
            in_specs=[
                pl.BlockSpec((1, N, C), lambda b: (b, 0, 0)),
                pl.BlockSpec((1, S, 2 * C), lambda b: (b, 0, 0)),
                pl.BlockSpec((1, N, Cout), lambda b: (b, 0, 0)),
                pl.BlockSpec((C, Cout), lambda b: (0, 0)),
                pl.BlockSpec((1, Cout), lambda b: (0, 0)),
            ],
            out_specs=pl.BlockSpec((1, N, Cout), lambda b: (b, 0, 0)),
        ),
        compiler_params=pltpu.CompilerParams(
            dimension_semantics=("parallel",),
            vmem_limit_bytes=_VMEM_LIMIT),
    )(q_proj, kv_proj, residual, wo, bo.reshape(1, Cout))


# ---------------------------------------------------------------------------
# Kernel 3: fused LN2 + MLP (fc1 -> GELU -> fc2) + residual, hidden-dim tiled
# ---------------------------------------------------------------------------
def _ln_mlp_kernel(x_ref, g_ref, be_ref, w1_ref, b1_ref, w2_ref, b2_ref,
                   o_ref, acc_ref, xn_ref):
    l = pl.program_id(1)

    @pl.when(l == 0)
    def _():
        # Residual + fc2 bias seed the accumulator; LayerNorm is computed ONCE
        # per row tile and cached in VMEM for all hidden-dim tiles.
        x = x_ref[...].astype(jnp.float32)         # residual tile (tm, C)
        acc_ref[...] = x + b2_ref[...].astype(jnp.float32)
        mu = jnp.mean(x, axis=-1, keepdims=True)
        xc = x - mu
        var = jnp.mean(xc * xc, axis=-1, keepdims=True)
        xn_ref[...] = xc * lax.rsqrt(var + LN_EPS) * g_ref[...] + be_ref[...]

    h = jnp.dot(xn_ref[...].astype(w1_ref.dtype), w1_ref[...],
                preferred_element_type=jnp.float32) + b1_ref[...]
    # TODO(synk): torch nn.GELU default is exact (erf) GELU; tanh approximation
    # used here (EUP-friendly), max deviation ~1e-3.
    h = jax.nn.gelu(h, approximate=True)
    acc_ref[...] += jnp.dot(h.astype(w2_ref.dtype), w2_ref[...],
                            preferred_element_type=jnp.float32)

    @pl.when(l == pl.num_programs(1) - 1)
    def _():
        o_ref[...] = acc_ref[...].astype(o_ref.dtype)


def layernorm_mlp(x, gamma, beta, w1, b1, w2, b2, *,
                  tm_target=256, th_target=512):
    """x + fc2(gelu(fc1(LayerNorm(x)))).  x: (M, C)."""
    M, C = x.shape
    Hid = w1.shape[1]
    tm = _pick_tile(M, tm_target, 8)
    th = _pick_tile(Hid, th_target, 128)
    return pl.pallas_call(
        _ln_mlp_kernel,
        out_shape=jax.ShapeDtypeStruct((M, C), x.dtype),
        grid_spec=pltpu.PrefetchScalarGridSpec(
            num_scalar_prefetch=0,
            grid=(M // tm, Hid // th),
            in_specs=[
                pl.BlockSpec((tm, C), lambda i, l: (i, 0)),
                pl.BlockSpec((1, C), lambda i, l: (0, 0)),
                pl.BlockSpec((1, C), lambda i, l: (0, 0)),
                pl.BlockSpec((C, th), lambda i, l: (0, l)),
                pl.BlockSpec((1, th), lambda i, l: (0, l)),
                pl.BlockSpec((th, C), lambda i, l: (l, 0)),
                pl.BlockSpec((1, C), lambda i, l: (0, 0)),
            ],
            out_specs=pl.BlockSpec((tm, C), lambda i, l: (i, 0)),
            scratch_shapes=[pltpu.VMEM((tm, C), jnp.float32),   # accumulator
                            pltpu.VMEM((tm, C), jnp.float32)],  # cached LN(x)
        ),
        compiler_params=pltpu.CompilerParams(
            dimension_semantics=("parallel", "arbitrary"),
            vmem_limit_bytes=_VMEM_LIMIT),
    )(x, gamma.reshape(1, C), beta.reshape(1, C),
      w1, b1.reshape(1, Hid), w2, b2.reshape(1, C))


# ---------------------------------------------------------------------------
# Parameters + forward
# ---------------------------------------------------------------------------
def init_params(key, dim, num_heads, mlp_ratio=4.0):
    del num_heads  # head count only affects the forward, not param shapes
    hidden = int(dim * mlp_ratio)
    k = jax.random.split(key, 16)
    s = 0.05
    f32 = jnp.float32
    return {
        "ln_q_g": 1.0 + 0.1 * jax.random.normal(k[0], (dim,), f32),
        "ln_q_b": 0.1 * jax.random.normal(k[1], (dim,), f32),
        "ln_k_g": 1.0 + 0.1 * jax.random.normal(k[2], (dim,), f32),
        "ln_k_b": 0.1 * jax.random.normal(k[3], (dim,), f32),
        # projection weights stored (in, out) == torch weight.T; qkv_bias=False
        "wq": s * jax.random.normal(k[4], (dim, dim), f32),
        "wk": s * jax.random.normal(k[5], (dim, dim), f32),
        "wv": s * jax.random.normal(k[6], (dim, dim), f32),
        "wo": s * jax.random.normal(k[7], (dim, dim), f32),
        "bo": s * jax.random.normal(k[8], (dim,), f32),
        "ln2_g": 1.0 + 0.1 * jax.random.normal(k[9], (dim,), f32),
        "ln2_b": 0.1 * jax.random.normal(k[10], (dim,), f32),
        "w1": s * jax.random.normal(k[11], (dim, hidden), f32),
        "b1": s * jax.random.normal(k[12], (hidden,), f32),
        "w2": s * jax.random.normal(k[13], (hidden, dim), f32),
        "b2": s * jax.random.normal(k[14], (dim,), f32),
    }


def cross_attn_block_forward(params, query, key_tokens, *, num_heads):
    B, N, C = query.shape
    S = key_tokens.shape[1]

    # Fused LayerNorm + projections. K/V share the input -> one (C, 2C) GEMM.
    w_kv = jnp.concatenate([params["wk"], params["wv"]], axis=1)      # (C, 2C)
    q = layernorm_matmul(query.reshape(B * N, C),
                         params["ln_q_g"], params["ln_q_b"], params["wq"])
    kv = layernorm_matmul(key_tokens.reshape(B * S, C),
                          params["ln_k_g"], params["ln_k_b"], w_kv)

    # Attention (all heads per batch step) + output projection + residual.
    x = attention_block(q.reshape(B, N, C), kv.reshape(B, S, 2 * C),
                        query, params["wo"], params["bo"],
                        num_heads=num_heads)

    # x = x + MLP(LN2(x)), fully fused.  (norm_post / drop_path are Identity.)
    x = layernorm_mlp(x.reshape(B * N, C),
                      params["ln2_g"], params["ln2_b"],
                      params["w1"], params["b1"],
                      params["w2"], params["b2"])
    return x.reshape(B, N, C)


# ---------------------------------------------------------------------------
# Pure-JAX reference
# ---------------------------------------------------------------------------
def cross_attn_block_reference(params, query, key_tokens, *, num_heads):
    B, N, C = query.shape
    S = key_tokens.shape[1]
    H, D = num_heads, C // num_heads
    scale = D ** (-0.5)

    def ln(x, g, b):
        mu = jnp.mean(x, -1, keepdims=True)
        var = jnp.mean((x - mu) ** 2, -1, keepdims=True)
        return (x - mu) / jnp.sqrt(var + LN_EPS) * g + b

    qn = ln(query, params["ln_q_g"], params["ln_q_b"])
    kn = ln(key_tokens, params["ln_k_g"], params["ln_k_b"])
    q = (qn @ params["wq"]).reshape(B, N, H, D).transpose(0, 2, 1, 3)
    k = (kn @ params["wk"]).reshape(B, S, H, D).transpose(0, 2, 1, 3)
    v = (kn @ params["wv"]).reshape(B, S, H, D).transpose(0, 2, 1, 3)
    attn = jax.nn.softmax(jnp.einsum("bhnd,bhsd->bhns", q, k) * scale, axis=-1)
    out = jnp.einsum("bhns,bhsd->bhnd", attn, v)
    out = out.transpose(0, 2, 1, 3).reshape(B, N, C)
    out = out @ params["wo"] + params["bo"]
    x = query + out
    xn = ln(x, params["ln2_g"], params["ln2_b"])
    h = jax.nn.gelu(xn @ params["w1"] + params["b1"], approximate=True)
    return x + (h @ params["w2"] + params["b2"])


if __name__ == "__main__":
    B, Nq, S, C, H = 2, 8, 16, 32, 4          # head_dim = 8, mlp hidden = 128
    root = jax.random.PRNGKey(0)
    kq, kk, kp = jax.random.split(root, 3)
    query = jax.random.normal(kq, (B, Nq, C), jnp.float32)
    key_tokens = jax.random.normal(kk, (B, S, C), jnp.float32)
    params = init_params(kp, dim=C, num_heads=H)

    fwd = jax.jit(cross_attn_block_forward, static_argnames=("num_heads",))
    out = fwd(params, query, key_tokens, num_heads=H)
    out = jax.block_until_ready(out)

    ref = cross_attn_block_reference(params, query, key_tokens, num_heads=H)
    assert out.shape == (B, Nq, C), out.shape
    err = float(jnp.max(jnp.abs(out - ref)))
    # tolerance allows for pl.reciprocal(approx=True) in the softmax denominator
    assert err < 5e-3, err

    print("KERNEL_OK")
</pallas_src>

<mosaic_0001>
module attributes {stable_mosaic.version = 11 : i64} {
  func.func @_ln_matmul_kernel(%arg0: i32, %arg1: i32, %arg2: memref<16x32xf32, #tpu.memory_space<vmem>>, %arg3: memref<1x32xf32, #tpu.memory_space<vmem>>, %arg4: memref<1x32xf32, #tpu.memory_space<vmem>>, %arg5: memref<32x32xf32, #tpu.memory_space<vmem>>, %arg6: memref<16x32xf32, #tpu.memory_space<vmem>>) attributes {dimension_semantics = [#tpu.dimension_semantics<parallel>, #tpu.dimension_semantics<parallel>], iteration_bounds = array<i64: 1, 1>, scalar_prefetch = 0 : i64, scratch_operands = 0 : i64, tpu.core_type = #tpu.core_type<tc>, window_params = [{transform_indices = @transform_0, window_bounds = array<i64: 16, 32>}, {pipeline_mode = #tpu.pipeline_mode<synchronous>, transform_indices = @transform_1, window_bounds = array<i64: 1, 32>}, {pipeline_mode = #tpu.pipeline_mode<synchronous>, transform_indices = @transform_2, window_bounds = array<i64: 1, 32>}, {transform_indices = @transform_3, window_bounds = array<i64: 32, 32>}, {transform_indices = @transform_4, window_bounds = array<i64: 16, 32>}]} {
    %c0 = arith.constant 0 : index
    %c0_0 = arith.constant 0 : index
    %0 = vector.load %arg2[%c0, %c0_0] : memref<16x32xf32, #tpu.memory_space<vmem>>, vector<16x32xf32>
    %cst = arith.constant dense<0.000000e+00> : vector<16xf32>
    %1 = vector.multi_reduction <add>, %0, %cst [1] : vector<16x32xf32> to vector<16xf32>
    %2 = vector.shape_cast %1 : vector<16xf32> to vector<16x1xf32>
    %cst_1 = arith.constant 3.200000e+01 : f32
    %3 = vector.broadcast %cst_1 : f32 to vector<16x1xf32>
    %4 = arith.divf %2, %3 : vector<16x1xf32>
    %5 = vector.broadcast %4 : vector<16x1xf32> to vector<16x32xf32>
    %6 = arith.subf %0, %5 : vector<16x32xf32>
    %7 = arith.mulf %6, %6 : vector<16x32xf32>
    %cst_2 = arith.constant dense<0.000000e+00> : vector<16xf32>
    %8 = vector.multi_reduction <add>, %7, %cst_2 [1] : vector<16x32xf32> to vector<16xf32>
    %9 = vector.shape_cast %8 : vector<16xf32> to vector<16x1xf32>
    %cst_3 = arith.constant 3.200000e+01 : f32
    %10 = vector.broadcast %cst_3 : f32 to vector<16x1xf32>
    %11 = arith.divf %9, %10 : vector<16x1xf32>
    %cst_4 = arith.constant 9.99999974E-6 : f32
    %12 = vector.broadcast %cst_4 : f32 to vector<16x1xf32>
    %13 = arith.addf %11, %12 : vector<16x1xf32>
    %14 = math.rsqrt %13 : vector<16x1xf32>
    %15 = vector.broadcast %14 : vector<16x1xf32> to vector<16x32xf32>
    %16 = arith.mulf %6, %15 : vector<16x32xf32>
    %c0_5 = arith.constant 0 : index
    %c0_6 = arith.constant 0 : index
    %17 = vector.load %arg3[%c0_5, %c0_6] : memref<1x32xf32, #tpu.memory_space<vmem>>, vector<1x32xf32>
    %18 = vector.broadcast %17 : vector<1x32xf32> to vector<16x32xf32>
    %19 = arith.mulf %16, %18 : vector<16x32xf32>
    %c0_7 = arith.constant 0 : index
    %c0_8 = arith.constant 0 : index
    %20 = vector.load %arg4[%c0_7, %c0_8] : memref<1x32xf32, #tpu.memory_space<vmem>>, vector<1x32xf32>
    %21 = vector.broadcast %20 : vector<1x32xf32> to vector<16x32xf32>
    %22 = arith.addf %19, %21 : vector<16x32xf32>
    %c0_9 = arith.constant 0 : index
    %c0_10 = arith.constant 0 : index
    %23 = vector.load %arg5[%c0_9, %c0_10] : memref<32x32xf32, #tpu.memory_space<vmem>>, vector<32x32xf32>
    %cst_11 = arith.constant dense<0.000000e+00> : vector<16x32xf32>
    %24 = tpu.matmul %22, %23, %cst_11 {dimension_numbers = #tpu.dot_dimension_numbers<[1], [0], [0], [1], [0, 0, 1, 1], [], []>} : vector<16x32xf32>, vector<32x32xf32>, vector<16x32xf32> -> vector<16x32xf32>
    %c0_12 = arith.constant 0 : index
    %c0_13 = arith.constant 0 : index
    %25 = vector.load %arg6[%c0_12, %c0_13] : memref<16x32xf32, #tpu.memory_space<vmem>>, vector<16x32xf32>
    tpu.vector_store %arg6[%c0_12, %c0_13], %24 {strides = array<i32>} : memref<16x32xf32, #tpu.memory_space<vmem>>, vector<16x32xf32>,
    return
  }
  func.func @transform_0(%arg0: i32, %arg1: i32) -> (i32, i32) {
    %c0_i32 = arith.constant 0 : i32
    %c0_i32_0 = arith.constant 0 : i32
    return %arg0, %c0_i32 : i32, i32
  }
  func.func @transform_1(%arg0: i32, %arg1: i32) -> (i32, i32) {
    %c0_i32 = arith.constant 0 : i32
    %c0_i32_0 = arith.constant 0 : i32
    %c0_i32_1 = arith.constant 0 : i32
    return %c0_i32, %c0_i32_0 : i32, i32
  }
  func.func @transform_2(%arg0: i32, %arg1: i32) -> (i32, i32) {
    %c0_i32 = arith.constant 0 : i32
    %c0_i32_0 = arith.constant 0 : i32
    %c0_i32_1 = arith.constant 0 : i32
    return %c0_i32, %c0_i32_0 : i32, i32
  }
  func.func @transform_3(%arg0: i32, %arg1: i32) -> (i32, i32) {
    %c0_i32 = arith.constant 0 : i32
    %c0_i32_0 = arith.constant 0 : i32
    return %c0_i32, %arg1 : i32, i32
  }
  func.func @transform_4(%arg0: i32, %arg1: i32) -> (i32, i32) {
    %c0_i32 = arith.constant 0 : i32
    return %arg0, %arg1 : i32, i32
  }
}

module attributes {stable_mosaic.version = 11 : i64} {
  func.func @_ln_matmul_kernel(%arg0: i32, %arg1: i32, %arg2: memref<32x32xf32, #tpu.memory_space<vmem>>, %arg3: memref<1x32xf32, #tpu.memory_space<vmem>>, %arg4: memref<1x32xf32, #tpu.memory_space<vmem>>, %arg5: memref<32x64xf32, #tpu.memory_space<vmem>>, %arg6: memref<32x64xf32, #tpu.memory_space<vmem>>) attributes {dimension_semantics = [#tpu.dimension_semantics<parallel>, #tpu.dimension_semantics<parallel>], iteration_bounds = array<i64: 1, 1>, scalar_prefetch = 0 : i64, scratch_operands = 0 : i64, tpu.core_type = #tpu.core_type<tc>, window_params = [{transform_indices = @transform_0, window_bounds = array<i64: 32, 32>}, {pipeline_mode = #tpu.pipeline_mode<synchronous>, transform_indices = @transform_1, window_bounds = array<i64: 1, 32>}, {pipeline_mode = #tpu.pipeline_mode<synchronous>, transform_indices = @transform_2, window_bounds = array<i64: 1, 32>}, {transform_indices = @transform_3, window_bounds = array<i64: 32, 64>}, {transform_indices = @transform_4, window_bounds = array<i64: 32, 64>}]} {
    %c0 = arith.constant 0 : index
    %c0_0 = arith.constant 0 : index
    %0 = vector.load %arg2[%c0, %c0_0] : memref<32x32xf32, #tpu.memory_space<vmem>>, vector<32x32xf32>
    %cst = arith.constant dense<0.000000e+00> : vector<32xf32>
    %1 = vector.multi_reduction <add>, %0, %cst [1] : vector<32x32xf32> to vector<32xf32>
    %2 = vector.shape_cast %1 : vector<32xf32> to vector<32x1xf32>
    %cst_1 = arith.constant 3.200000e+01 : f32
    %3 = vector.broadcast %cst_1 : f32 to vector<32x1xf32>
    %4 = arith.divf %2, %3 : vector<32x1xf32>
    %5 = vector.broadcast %4 : vector<32x1xf32> to vector<32x32xf32>
    %6 = arith.subf %0, %5 : vector<32x32xf32>
    %7 = arith.mulf %6, %6 : vector<32x32xf32>
    %cst_2 = arith.constant dense<0.000000e+00> : vector<32xf32>
    %8 = vector.multi_reduction <add>, %7, %cst_2 [1] : vector<32x32xf32> to vector<32xf32>
    %9 = vector.shape_cast %8 : vector<32xf32> to vector<32x1xf32>
    %cst_3 = arith.constant 3.200000e+01 : f32
    %10 = vector.broadcast %cst_3 : f32 to vector<32x1xf32>
    %11 = arith.divf %9, %10 : vector<32x1xf32>
    %cst_4 = arith.constant 9.99999974E-6 : f32
    %12 = vector.broadcast %cst_4 : f32 to vector<32x1xf32>
    %13 = arith.addf %11, %12 : vector<32x1xf32>
    %14 = math.rsqrt %13 : vector<32x1xf32>
    %15 = vector.broadcast %14 : vector<32x1xf32> to vector<32x32xf32>
    %16 = arith.mulf %6, %15 : vector<32x32xf32>
    %c0_5 = arith.constant 0 : index
    %c0_6 = arith.constant 0 : index
    %17 = vector.load %arg3[%c0_5, %c0_6] : memref<1x32xf32, #tpu.memory_space<vmem>>, vector<1x32xf32>
    %18 = vector.broadcast %17 : vector<1x32xf32> to vector<32x32xf32>
    %19 = arith.mulf %16, %18 : vector<32x32xf32>
    %c0_7 = arith.constant 0 : index
    %c0_8 = arith.constant 0 : index
    %20 = vector.load %arg4[%c0_7, %c0_8] : memref<1x32xf32, #tpu.memory_space<vmem>>, vector<1x32xf32>
    %21 = vector.broadcast %20 : vector<1x32xf32> to vector<32x32xf32>
    %22 = arith.addf %19, %21 : vector<32x32xf32>
    %c0_9 = arith.constant 0 : index
    %c0_10 = arith.constant 0 : index
    %23 = vector.load %arg5[%c0_9, %c0_10] : memref<32x64xf32, #tpu.memory_space<vmem>>, vector<32x64xf32>
    %cst_11 = arith.constant dense<0.000000e+00> : vector<32x64xf32>
    %24 = tpu.matmul %22, %23, %cst_11 {dimension_numbers = #tpu.dot_dimension_numbers<[1], [0], [0], [1], [0, 0, 1, 1], [], []>} : vector<32x32xf32>, vector<32x64xf32>, vector<32x64xf32> -> vector<32x64xf32>
    %c0_12 = arith.constant 0 : index
    %c0_13 = arith.constant 0 : index
    %25 = vector.load %arg6[%c0_12, %c0_13] : memref<32x64xf32, #tpu.memory_space<vmem>>, vector<32x64xf32>
    tpu.vector_store %arg6[%c0_12, %c0_13], %24 {strides = array<i32>} : memref<32x64xf32, #tpu.memory_space<vmem>>, vector<32x64xf32>,
    return
  }
  func.func @transform_0(%arg0: i32, %arg1: i32) -> (i32, i32) {
    %c0_i32 = arith.constant 0 : i32
    %c0_i32_0 = arith.constant 0 : i32
    return %arg0, %c0_i32 : i32, i32
  }
  func.func @transform_1(%arg0: i32, %arg1: i32) -> (i32, i32) {
    %c0_i32 = arith.constant 0 : i32
    %c0_i32_0 = arith.constant 0 : i32
    %c0_i32_1 = arith.constant 0 : i32
    return %c0_i32, %c0_i32_0 : i32, i32
  }
  func.func @transform_2(%arg0: i32, %arg1: i32) -> (i32, i32) {
    %c0_i32 = arith.constant 0 : i32
    %c0_i32_0 = arith.constant 0 : i32
    %c0_i32_1 = arith.constant 0 : i32
    return %c0_i32, %c0_i32_0 : i32, i32
  }
  func.func @transform_3(%arg0: i32, %arg1: i32) -> (i32, i32) {
    %c0_i32 = arith.constant 0 : i32
    %c0_i32_0 = arith.constant 0 : i32
    return %c0_i32, %arg1 : i32, i32
  }
  func.func @transform_4(%arg0: i32, %arg1: i32) -> (i32, i32) {
    %c0_i32 = arith.constant 0 : i32
    return %arg0, %arg1 : i32, i32
  }
}

module attributes {stable_mosaic.version = 11 : i64} {
  func.func @_attn_kernel(%arg0: i32, %arg1: memref<1x8x32xf32, #tpu.memory_space<vmem>>, %arg2: memref<1x16x64xf32, #tpu.memory_space<vmem>>, %arg3: memref<1x8x32xf32, #tpu.memory_space<vmem>>, %arg4: memref<32x32xf32, #tpu.memory_space<vmem>>, %arg5: memref<1x32xf32, #tpu.memory_space<vmem>>, %arg6: memref<1x8x32xf32, #tpu.memory_space<vmem>>) attributes {dimension_semantics = [#tpu.dimension_semantics<parallel>], iteration_bounds = array<i64: 2>, scalar_prefetch = 0 : i64, scratch_operands = 0 : i64, tpu.core_type = #tpu.core_type<tc>, window_params = [{transform_indices = @transform_0, window_bounds = array<i64: 1, 8, 32>}, {transform_indices = @transform_1, window_bounds = array<i64: 1, 16, 64>}, {transform_indices = @transform_2, window_bounds = array<i64: 1, 8, 32>}, {pipeline_mode = #tpu.pipeline_mode<synchronous>, transform_indices = @transform_3, window_bounds = array<i64: 32, 32>}, {pipeline_mode = #tpu.pipeline_mode<synchronous>, transform_indices = @transform_4, window_bounds = array<i64: 1, 32>}, {transform_indices = @transform_5, window_bounds = array<i64: 1, 8, 32>}]} {
    %c0 = arith.constant 0 : index
    %c0_0 = arith.constant 0 : index
    %c0_1 = arith.constant 0 : index
    %0 = vector.load %arg1[%c0, %c0_0, %c0_1] : memref<1x8x32xf32, #tpu.memory_space<vmem>>, vector<1x8x32xf32>
    %1 = vector.shape_cast %0 : vector<1x8x32xf32> to vector<8x32xf32>
    %c0_2 = arith.constant 0 : index
    %c0_3 = arith.constant 0 : index
    %c0_4 = arith.constant 0 : index
    %2 = vector.load %arg2[%c0_2, %c0_3, %c0_4] : memref<1x16x64xf32, #tpu.memory_space<vmem>>, vector<1x16x64xf32>
    %3 = vector.shape_cast %2 : vector<1x16x64xf32> to vector<16x64xf32>
    %c0_5 = arith.constant 0 : index
    %c0_6 = arith.constant 0 : index
    %4 = vector.load %arg4[%c0_5, %c0_6] : memref<32x32xf32, #tpu.memory_space<vmem>>, vector<32x32xf32>
    %c0_7 = arith.constant 0 : index
    %c0_8 = arith.constant 0 : index
    %c0_9 = arith.constant 0 : index
    %5 = vector.load %arg3[%c0_7, %c0_8, %c0_9] : memref<1x8x32xf32, #tpu.memory_space<vmem>>, vector<1x8x32xf32>
    %6 = vector.shape_cast %5 : vector<1x8x32xf32> to vector<8x32xf32>
    %c0_10 = arith.constant 0 : index
    %c0_11 = arith.constant 0 : index
    %7 = vector.load %arg5[%c0_10, %c0_11] : memref<1x32xf32, #tpu.memory_space<vmem>>, vector<1x32xf32>
    %8 = vector.broadcast %7 : vector<1x32xf32> to vector<8x32xf32>
    %9 = arith.addf %6, %8 : vector<8x32xf32>
    %10 = vector.extract_strided_slice %1 {offsets = [0, 0], sizes = [8, 8], strides = [1, 1]} : vector<8x32xf32> to vector<8x8xf32>
    %11 = vector.extract_strided_slice %3 {offsets = [0, 0], sizes = [16, 8], strides = [1, 1]} : vector<16x64xf32> to vector<16x8xf32>
    %12 = vector.extract_strided_slice %3 {offsets = [0, 32], sizes = [16, 8], strides = [1, 1]} : vector<16x64xf32> to vector<16x8xf32>
    %cst = arith.constant dense<0.000000e+00> : vector<8x16xf32>
    %13 = tpu.matmul %10, %11, %cst {dimension_numbers = #tpu.dot_dimension_numbers<[1], [1], [0], [0], [0, 0, 1, 0], [], []>} : vector<8x8xf32>, vector<16x8xf32>, vector<8x16xf32> -> vector<8x16xf32>
    %cst_12 = arith.constant 0.353553385 : f32
    %14 = vector.broadcast %cst_12 : f32 to vector<8x16xf32>
    %15 = arith.mulf %13, %14 : vector<8x16xf32>
    %cst_13 = arith.constant dense<0xFF800000> : vector<8xf32>
    %16 = vector.multi_reduction <maximumf>, %15, %cst_13 [1] : vector<8x16xf32> to vector<8xf32>
    %17 = vector.shape_cast %16 : vector<8xf32> to vector<8x1xf32>
    %18 = vector.broadcast %17 : vector<8x1xf32> to vector<8x16xf32>
    %19 = arith.subf %15, %18 : vector<8x16xf32>
    %20 = math.exp %19 : vector<8x16xf32>
    %cst_14 = arith.constant dense<0.000000e+00> : vector<8xf32>
    %21 = vector.multi_reduction <add>, %20, %cst_14 [1] : vector<8x16xf32> to vector<8xf32>
    %22 = vector.shape_cast %21 : vector<8xf32> to vector<8x1xf32>
    %23 = tpu.reciprocal %22 {approx = true} : vector<8x1xf32> -> vector<8x1xf32>
    %24 = vector.broadcast %23 : vector<8x1xf32> to vector<8x16xf32>
    %25 = arith.mulf %20, %24 : vector<8x16xf32>
    %cst_15 = arith.constant dense<0.000000e+00> : vector<8x8xf32>
    %26 = tpu.matmul %25, %12, %cst_15 {dimension_numbers = #tpu.dot_dimension_numbers<[1], [0], [0], [1], [0, 0, 1, 1], [], []>} : vector<8x16xf32>, vector<16x8xf32>, vector<8x8xf32> -> vector<8x8xf32>
    %27 = vector.extract_strided_slice %4 {offsets = [0, 0], sizes = [8, 32], strides = [1, 1]} : vector<32x32xf32> to vector<8x32xf32>
    %cst_16 = arith.constant dense<0.000000e+00> : vector<8x32xf32>
    %28 = tpu.matmul %26, %27, %cst_16 {dimension_numbers = #tpu.dot_dimension_numbers<[1], [0], [0], [1], [0, 0, 1, 1], [], []>} : vector<8x8xf32>, vector<8x32xf32>, vector<8x32xf32> -> vector<8x32xf32>
    %29 = arith.addf %9, %28 : vector<8x32xf32>
    %30 = vector.extract_strided_slice %1 {offsets = [0, 8], sizes = [8, 8], strides = [1, 1]} : vector<8x32xf32> to vector<8x8xf32>
    %31 = vector.extract_strided_slice %3 {offsets = [0, 8], sizes = [16, 8], strides = [1, 1]} : vector<16x64xf32> to vector<16x8xf32>
    %32 = vector.extract_strided_slice %3 {offsets = [0, 40], sizes = [16, 8], strides = [1, 1]} : vector<16x64xf32> to vector<16x8xf32>
    %cst_17 = arith.constant dense<0.000000e+00> : vector<8x16xf32>
    %33 = tpu.matmul %30, %31, %cst_17 {dimension_numbers = #tpu.dot_dimension_numbers<[1], [1], [0], [0], [0, 0, 1, 0], [], []>} : vector<8x8xf32>, vector<16x8xf32>, vector<8x16xf32> -> vector<8x16xf32>
    %cst_18 = arith.constant 0.353553385 : f32
    %34 = vector.broadcast %cst_18 : f32 to vector<8x16xf32>
    %35 = arith.mulf %33, %34 : vector<8x16xf32>
    %cst_19 = arith.constant dense<0xFF800000> : vector<8xf32>
    %36 = vector.multi_reduction <maximumf>, %35, %cst_19 [1] : vector<8x16xf32> to vector<8xf32>
    %37 = vector.shape_cast %36 : vector<8xf32> to vector<8x1xf32>
    %38 = vector.broadcast %37 : vector<8x1xf32> to vector<8x16xf32>
    %39 = arith.subf %35, %38 : vector<8x16xf32>
    %40 = math.exp %39 : vector<8x16xf32>
    %cst_20 = arith.constant dense<0.000000e+00> : vector<8xf32>
    %41 = vector.multi_reduction <add>, %40, %cst_20 [1] : vector<8x16xf32> to vector<8xf32>
    %42 = vector.shape_cast %41 : vector<8xf32> to vector<8x1xf32>
    %43 = tpu.reciprocal %42 {approx = true} : vector<8x1xf32> -> vector<8x1xf32>
    %44 = vector.broadcast %43 : vector<8x1xf32> to vector<8x16xf32>
    %45 = arith.mulf %40, %44 : vector<8x16xf32>
    %cst_21 = arith.constant dense<0.000000e+00> : vector<8x8xf32>
    %46 = tpu.matmul %45, %32, %cst_21 {dimension_numbers = #tpu.dot_dimension_numbers<[1], [0], [0], [1], [0, 0, 1, 1], [], []>} : vector<8x16xf32>, vector<16x8xf32>, vector<8x8xf32> -> vector<8x8xf32>
    %47 = vector.extract_strided_slice %4 {offsets = [8, 0], sizes = [8, 32], strides = [1, 1]} : vector<32x32xf32> to vector<8x32xf32>
    %cst_22 = arith.constant dense<0.000000e+00> : vector<8x32xf32>
    %48 = tpu.matmul %46, %47, %cst_22 {dimension_numbers = #tpu.dot_dimension_numbers<[1], [0], [0], [1], [0, 0, 1, 1], [], []>} : vector<8x8xf32>, vector<8x32xf32>, vector<8x32xf32> -> vector<8x32xf32>
    %49 = arith.addf %29, %48 : vector<8x32xf32>
    %50 = vector.extract_strided_slice %1 {offsets = [0, 16], sizes = [8, 8], strides = [1, 1]} : vector<8x32xf32> to vector<8x8xf32>
    %51 = vector.extract_strided_slice %3 {offsets = [0, 16], sizes = [16, 8], strides = [1, 1]} : vector<16x64xf32> to vector<16x8xf32>
    %52 = vector.extract_strided_slice %3 {offsets = [0, 48], sizes = [16, 8], strides = [1, 1]} : vector<16x64xf32> to vector<16x8xf32>
    %cst_23 = arith.constant dense<0.000000e+00> : vector<8x16xf32>
    %53 = tpu.matmul %50, %51, %cst_23 {dimension_numbers = #tpu.dot_dimension_numbers<[1], [1], [0], [0], [0, 0, 1, 0], [], []>} : vector<8x8xf32>, vector<16x8xf32>, vector<8x16xf32> -> vector<8x16xf32>
    %cst_24 = arith.constant 0.353553385 : f32
    %54 = vector.broadcast %cst_24 : f32 to vector<8x16xf32>
    %55 = arith.mulf %53, %54 : vector<8x16xf32>
    %cst_25 = arith.constant dense<0xFF800000> : vector<8xf32>
    %56 = vector.multi_reduction <maximumf>, %55, %cst_25 [1] : vector<8x16xf32> to vector<8xf32>
    %57 = vector.shape_cast %56 : vector<8xf32> to vector<8x1xf32>
    %58 = vector.broadcast %57 : vector<8x1xf32> to vector<8x16xf32>
    %59 = arith.subf %55, %58 : vector<8x16xf32>
    %60 = math.exp %59 : vector<8x16xf32>
    %cst_26 = arith.constant dense<0.000000e+00> : vector<8xf32>
    %61 = vector.multi_reduction <add>, %60, %cst_26 [1] : vector<8x16xf32> to vector<8xf32>
    %62 = vector.shape_cast %61 : vector<8xf32> to vector<8x1xf32>
    %63 = tpu.reciprocal %62 {approx = true} : vector<8x1xf32> -> vector<8x1xf32>
    %64 = vector.broadcast %63 : vector<8x1xf32> to vector<8x16xf32>
    %65 = arith.mulf %60, %64 : vector<8x16xf32>
    %cst_27 = arith.constant dense<0.000000e+00> : vector<8x8xf32>
    %66 = tpu.matmul %65, %52, %cst_27 {dimension_numbers = #tpu.dot_dimension_numbers<[1], [0], [0], [1], [0, 0, 1, 1], [], []>} : vector<8x16xf32>, vector<16x8xf32>, vector<8x8xf32> -> vector<8x8xf32>
    %67 = vector.extract_strided_slice %4 {offsets = [16, 0], sizes = [8, 32], strides = [1, 1]} : vector<32x32xf32> to vector<8x32xf32>
    %cst_28 = arith.constant dense<0.000000e+00> : vector<8x32xf32>
    %68 = tpu.matmul %66, %67, %cst_28 {dimension_numbers = #tpu.dot_dimension_numbers<[1], [0], [0], [1], [0, 0, 1, 1], [], []>} : vector<8x8xf32>, vector<8x32xf32>, vector<8x32xf32> -> vector<8x32xf32>
    %69 = arith.addf %49, %68 : vector<8x32xf32>
    %70 = vector.extract_strided_slice %1 {offsets = [0, 24], sizes = [8, 8], strides = [1, 1]} : vector<8x32xf32> to vector<8x8xf32>
    %71 = vector.extract_strided_slice %3 {offsets = [0, 24], sizes = [16, 8], strides = [1, 1]} : vector<16x64xf32> to vector<16x8xf32>
    %72 = vector.extract_strided_slice %3 {offsets = [0, 56], sizes = [16, 8], strides = [1, 1]} : vector<16x64xf32> to vector<16x8xf32>
    %cst_29 = arith.constant dense<0.000000e+00> : vector<8x16xf32>
    %73 = tpu.matmul %70, %71, %cst_29 {dimension_numbers = #tpu.dot_dimension_numbers<[1], [1], [0], [0], [0, 0, 1, 0], [], []>} : vector<8x8xf32>, vector<16x8xf32>, vector<8x16xf32> -> vector<8x16xf32>
    %cst_30 = arith.constant 0.353553385 : f32
    %74 = vector.broadcast %cst_30 : f32 to vector<8x16xf32>
    %75 = arith.mulf %73, %74 : vector<8x16xf32>
    %cst_31 = arith.constant dense<0xFF800000> : vector<8xf32>
    %76 = vector.multi_reduction <maximumf>, %75, %cst_31 [1] : vector<8x16xf32> to vector<8xf32>
    %77 = vector.shape_cast %76 : vector<8xf32> to vector<8x1xf32>
    %78 = vector.broadcast %77 : vector<8x1xf32> to vector<8x16xf32>
    %79 = arith.subf %75, %78 : vector<8x16xf32>
    %80 = math.exp %79 : vector<8x16xf32>
    %cst_32 = arith.constant dense<0.000000e+00> : vector<8xf32>
    %81 = vector.multi_reduction <add>, %80, %cst_32 [1] : vector<8x16xf32> to vector<8xf32>
    %82 = vector.shape_cast %81 : vector<8xf32> to vector<8x1xf32>
    %83 = tpu.reciprocal %82 {approx = true} : vector<8x1xf32> -> vector<8x1xf32>
    %84 = vector.broadcast %83 : vector<8x1xf32> to vector<8x16xf32>
    %85 = arith.mulf %80, %84 : vector<8x16xf32>
    %cst_33 = arith.constant dense<0.000000e+00> : vector<8x8xf32>
    %86 = tpu.matmul %85, %72, %cst_33 {dimension_numbers = #tpu.dot_dimension_numbers<[1], [0], [0], [1], [0, 0, 1, 1], [], []>} : vector<8x16xf32>, vector<16x8xf32>, vector<8x8xf32> -> vector<8x8xf32>
    %87 = vector.extract_strided_slice %4 {offsets = [24, 0], sizes = [8, 32], strides = [1, 1]} : vector<32x32xf32> to vector<8x32xf32>
    %cst_34 = arith.constant dense<0.000000e+00> : vector<8x32xf32>
    %88 = tpu.matmul %86, %87, %cst_34 {dimension_numbers = #tpu.dot_dimension_numbers<[1], [0], [0], [1], [0, 0, 1, 1], [], []>} : vector<8x8xf32>, vector<8x32xf32>, vector<8x32xf32> -> vector<8x32xf32>
    %89 = arith.addf %69, %88 : vector<8x32xf32>
    %c0_35 = arith.constant 0 : index
    %c0_36 = arith.constant 0 : index
    %c0_37 = arith.constant 0 : index
    %90 = vector.load %arg6[%c0_35, %c0_36, %c0_37] : memref<1x8x32xf32, #tpu.memory_space<vmem>>, vector<1x8x32xf32>
    %91 = vector.shape_cast %90 : vector<1x8x32xf32> to vector<8x32xf32>
    %92 = vector.shape_cast %89 : vector<8x32xf32> to vector<1x8x32xf32>
    tpu.vector_store %arg6[%c0_35, %c0_36, %c0_37], %92 {strides = array<i32>} : memref<1x8x32xf32, #tpu.memory_space<vmem>>, vector<1x8x32xf32>,
    return
  }
  func.func @transform_0(%arg0: i32) -> (i32, i32, i32) {
    %c0_i32 = arith.constant 0 : i32
    %c0_i32_0 = arith.constant 0 : i32
    %c0_i32_1 = arith.constant 0 : i32
    return %arg0, %c0_i32, %c0_i32_0 : i32, i32, i32
  }
  func.func @transform_1(%arg0: i32) -> (i32, i32, i32) {
    %c0_i32 = arith.constant 0 : i32
    %c0_i32_0 = arith.constant 0 : i32
    %c0_i32_1 = arith.constant 0 : i32
    return %arg0, %c0_i32, %c0_i32_0 : i32, i32, i32
  }
  func.func @transform_2(%arg0: i32) -> (i32, i32, i32) {
    %c0_i32 = arith.constant 0 : i32
    %c0_i32_0 = arith.constant 0 : i32
    %c0_i32_1 = arith.constant 0 : i32
    return %arg0, %c0_i32, %c0_i32_0 : i32, i32, i32
  }
  func.func @transform_3(%arg0: i32) -> (i32, i32) {
    %c0_i32 = arith.constant 0 : i32
    %c0_i32_0 = arith.constant 0 : i32
    %c0_i32_1 = arith.constant 0 : i32
    return %c0_i32, %c0_i32_0 : i32, i32
  }
  func.func @transform_4(%arg0: i32) -> (i32, i32) {
    %c0_i32 = arith.constant 0 : i32
    %c0_i32_0 = arith.constant 0 : i32
    %c0_i32_1 = arith.constant 0 : i32
    return %c0_i32, %c0_i32_0 : i32, i32
  }
  func.func @transform_5(%arg0: i32) -> (i32, i32, i32) {
    %c0_i32 = arith.constant 0 : i32
    %c0_i32_0 = arith.constant 0 : i32
    %c0_i32_1 = arith.constant 0 : i32
    return %arg0, %c0_i32, %c0_i32_0 : i32, i32, i32
  }
}

module attributes {stable_mosaic.version = 11 : i64} {
  func.func @_ln_mlp_kernel(%arg0: i32, %arg1: i32, %arg2: memref<16x32xf32, #tpu.memory_space<vmem>>, %arg3: memref<1x32xf32, #tpu.memory_space<vmem>>, %arg4: memref<1x32xf32, #tpu.memory_space<vmem>>, %arg5: memref<32x128xf32, #tpu.memory_space<vmem>>, %arg6: memref<1x128xf32, #tpu.memory_space<vmem>>, %arg7: memref<128x32xf32, #tpu.memory_space<vmem>>, %arg8: memref<1x32xf32, #tpu.memory_space<vmem>>, %arg9: memref<16x32xf32, #tpu.memory_space<vmem>>, %arg10: memref<16x32xf32, #tpu.memory_space<vmem>>, %arg11: memref<16x32xf32, #tpu.memory_space<vmem>>) attributes {dimension_semantics = [#tpu.dimension_semantics<parallel>, #tpu.dimension_semantics<arbitrary>], iteration_bounds = array<i64: 1, 1>, scalar_prefetch = 0 : i64, scratch_operands = 2 : i64, tpu.core_type = #tpu.core_type<tc>, window_params = [{transform_indices = @transform_0, window_bounds = array<i64: 16, 32>}, {pipeline_mode = #tpu.pipeline_mode<synchronous>, transform_indices = @transform_1, window_bounds = array<i64: 1, 32>}, {pipeline_mode = #tpu.pipeline_mode<synchronous>, transform_indices = @transform_2, window_bounds = array<i64: 1, 32>}, {transform_indices = @transform_3, window_bounds = array<i64: 32, 128>}, {transform_indices = @transform_4, window_bounds = array<i64: 1, 128>}, {transform_indices = @transform_5, window_bounds = array<i64: 128, 32>}, {pipeline_mode = #tpu.pipeline_mode<synchronous>, transform_indices = @transform_6, window_bounds = array<i64: 1, 32>}, {transform_indices = @transform_7, window_bounds = array<i64: 16, 32>}]} {
    %c0_i32 = arith.constant 0 : i32
    %0 = arith.cmpi eq, %arg1, %c0_i32 : i32
    %1 = arith.extui %0 : i1 to i32
    %c0_i32_0 = arith.constant 0 : i32
    %2 = arith.cmpi ne, %1, %c0_i32_0 : i32
    scf.if %2 {
      %c0_19 = arith.constant 0 : index
      %c0_20 = arith.constant 0 : index
      %30 = vector.load %arg2[%c0_19, %c0_20] : memref<16x32xf32, #tpu.memory_space<vmem>>, vector<16x32xf32>
      %c0_21 = arith.constant 0 : index
      %c0_22 = arith.constant 0 : index
      %31 = vector.load %arg8[%c0_21, %c0_22] : memref<1x32xf32, #tpu.memory_space<vmem>>, vector<1x32xf32>
      %32 = vector.broadcast %31 : vector<1x32xf32> to vector<16x32xf32>
      %33 = arith.addf %30, %32 : vector<16x32xf32>
      %c0_23 = arith.constant 0 : index
      %c0_24 = arith.constant 0 : index
      %34 = vector.load %arg10[%c0_23, %c0_24] : memref<16x32xf32, #tpu.memory_space<vmem>>, vector<16x32xf32>
      tpu.vector_store %arg10[%c0_23, %c0_24], %33 {strides = array<i32>} : memref<16x32xf32, #tpu.memory_space<vmem>>, vector<16x32xf32>,
      %cst_25 = arith.constant dense<0.000000e+00> : vector<16xf32>
      %35 = vector.multi_reduction <add>, %30, %cst_25 [1] : vector<16x32xf32> to vector<16xf32>
      %36 = vector.shape_cast %35 : vector<16xf32> to vector<16x1xf32>
      %cst_26 = arith.constant 3.200000e+01 : f32
      %37 = vector.broadcast %cst_26 : f32 to vector<16x1xf32>
      %38 = arith.divf %36, %37 : vector<16x1xf32>
      %39 = vector.broadcast %38 : vector<16x1xf32> to vector<16x32xf32>
      %40 = arith.subf %30, %39 : vector<16x32xf32>
      %41 = arith.mulf %40, %40 : vector<16x32xf32>
      %cst_27 = arith.constant dense<0.000000e+00> : vector<16xf32>
      %42 = vector.multi_reduction <add>, %41, %cst_27 [1] : vector<16x32xf32> to vector<16xf32>
      %43 = vector.shape_cast %42 : vector<16xf32> to vector<16x1xf32>
      %cst_28 = arith.constant 3.200000e+01 : f32
      %44 = vector.broadcast %cst_28 : f32 to vector<16x1xf32>
      %45 = arith.divf %43, %44 : vector<16x1xf32>
      %cst_29 = arith.constant 9.99999974E-6 : f32
      %46 = vector.broadcast %cst_29 : f32 to vector<16x1xf32>
      %47 = arith.addf %45, %46 : vector<16x1xf32>
      %48 = math.rsqrt %47 : vector<16x1xf32>
      %49 = vector.broadcast %48 : vector<16x1xf32> to vector<16x32xf32>
      %50 = arith.mulf %40, %49 : vector<16x32xf32>
      %c0_30 = arith.constant 0 : index
      %c0_31 = arith.constant 0 : index
      %51 = vector.load %arg3[%c0_30, %c0_31] : memref<1x32xf32, #tpu.memory_space<vmem>>, vector<1x32xf32>
      %52 = vector.broadcast %51 : vector<1x32xf32> to vector<16x32xf32>
      %53 = arith.mulf %50, %52 : vector<16x32xf32>
      %c0_32 = arith.constant 0 : index
      %c0_33 = arith.constant 0 : index
      %54 = vector.load %arg4[%c0_32, %c0_33] : memref<1x32xf32, #tpu.memory_space<vmem>>, vector<1x32xf32>
      %55 = vector.broadcast %54 : vector<1x32xf32> to vector<16x32xf32>
      %56 = arith.addf %53, %55 : vector<16x32xf32>
      %c0_34 = arith.constant 0 : index
      %c0_35 = arith.constant 0 : index
      %57 = vector.load %arg11[%c0_34, %c0_35] : memref<16x32xf32, #tpu.memory_space<vmem>>, vector<16x32xf32>
      tpu.vector_store %arg11[%c0_34, %c0_35], %56 {strides = array<i32>} : memref<16x32xf32, #tpu.memory_space<vmem>>, vector<16x32xf32>,
    } else {
    }
    %c0 = arith.constant 0 : index
    %c0_1 = arith.constant 0 : index
    %3 = vector.load %arg11[%c0, %c0_1] : memref<16x32xf32, #tpu.memory_space<vmem>>, vector<16x32xf32>
    %c0_2 = arith.constant 0 : index
    %c0_3 = arith.constant 0 : index
    %4 = vector.load %arg5[%c0_2, %c0_3] : memref<32x128xf32, #tpu.memory_space<vmem>>, vector<32x128xf32>
    %cst = arith.constant dense<0.000000e+00> : vector<16x128xf32>
    %5 = tpu.matmul %3, %4, %cst {dimension_numbers = #tpu.dot_dimension_numbers<[1], [0], [0], [1], [0, 0, 1, 1], [], []>} : vector<16x32xf32>, vector<32x128xf32>, vector<16x128xf32> -> vector<16x128xf32>
    %c0_4 = arith.constant 0 : index
    %c0_5 = arith.constant 0 : index
    %6 = vector.load %arg6[%c0_4, %c0_5] : memref<1x128xf32, #tpu.memory_space<vmem>>, vector<1x128xf32>
    %7 = vector.broadcast %6 : vector<1x128xf32> to vector<16x128xf32>
    %8 = arith.addf %5, %7 : vector<16x128xf32>
    %9 = arith.mulf %8, %8 : vector<16x128xf32>
    %10 = arith.mulf %8, %9 : vector<16x128xf32>
    %cst_6 = arith.constant 4.471500e-02 : f32
    %11 = vector.broadcast %cst_6 : f32 to vector<16x128xf32>
    %12 = arith.mulf %11, %10 : vector<16x128xf32>
    %13 = arith.addf %8, %12 : vector<16x128xf32>
    %cst_7 = arith.constant 0.797884583 : f32
    %14 = vector.broadcast %cst_7 : f32 to vector<16x128xf32>
    %15 = arith.mulf %14, %13 : vector<16x128xf32>
    %16 = math.tanh %15 : vector<16x128xf32>
    %cst_8 = arith.constant 1.000000e+00 : f32
    %17 = vector.broadcast %cst_8 : f32 to vector<16x128xf32>
    %18 = arith.addf %17, %16 : vector<16x128xf32>
    %cst_9 = arith.constant 5.000000e-01 : f32
    %19 = vector.broadcast %cst_9 : f32 to vector<16x128xf32>
    %20 = arith.mulf %19, %18 : vector<16x128xf32>
    %21 = arith.mulf %8, %20 : vector<16x128xf32>
    %c0_10 = arith.constant 0 : index
    %c0_11 = arith.constant 0 : index
    %22 = vector.load %arg10[%c0_10, %c0_11] : memref<16x32xf32, #tpu.memory_space<vmem>>, vector<16x32xf32>
    %c0_12 = arith.constant 0 : index
    %c0_13 = arith.constant 0 : index
    %23 = vector.load %arg7[%c0_12, %c0_13] : memref<128x32xf32, #tpu.memory_space<vmem>>, vector<128x32xf32>
    %cst_14 = arith.constant dense<0.000000e+00> : vector<16x32xf32>
    %24 = tpu.matmul %21, %23, %cst_14 {dimension_numbers = #tpu.dot_dimension_numbers<[1], [0], [0], [1], [0, 0, 1, 1], [], []>} : vector<16x128xf32>, vector<128x32xf32>, vector<16x32xf32> -> vector<16x32xf32>
    %25 = arith.addf %22, %24 : vector<16x32xf32>
    %c0_15 = arith.constant 0 : index
    %c0_16 = arith.constant 0 : index
    %26 = vector.load %arg10[%c0_15, %c0_16] : memref<16x32xf32, #tpu.memory_space<vmem>>, vector<16x32xf32>
    tpu.vector_store %arg10[%c0_15, %c0_16], %25 {strides = array<i32>} : memref<16x32xf32, #tpu.memory_space<vmem>>, vector<16x32xf32>,
    %c0_i32_17 = arith.constant 0 : i32
    %27 = arith.cmpi eq, %arg1, %c0_i32_17 : i32
    %28 = arith.extui %27 : i1 to i32
    %c0_i32_18 = arith.constant 0 : i32
    %29 = arith.cmpi ne, %28, %c0_i32_18 : i32
    scf.if %29 {
      %c0_19 = arith.constant 0 : index
      %c0_20 = arith.constant 0 : index
      %30 = vector.load %arg10[%c0_19, %c0_20] : memref<16x32xf32, #tpu.memory_space<vmem>>, vector<16x32xf32>
      %c0_21 = arith.constant 0 : index
      %c0_22 = arith.constant 0 : index
      %31 = vector.load %arg9[%c0_21, %c0_22] : memref<16x32xf32, #tpu.memory_space<vmem>>, vector<16x32xf32>
      tpu.vector_store %arg9[%c0_21, %c0_22], %30 {strides = array<i32>} : memref<16x32xf32, #tpu.memory_space<vmem>>, vector<16x32xf32>,
    } else {
    }
    return
  }
  func.func @transform_0(%arg0: i32, %arg1: i32) -> (i32, i32) {
    %c0_i32 = arith.constant 0 : i32
    %c0_i32_0 = arith.constant 0 : i32
    return %arg0, %c0_i32 : i32, i32
  }
  func.func @transform_1(%arg0: i32, %arg1: i32) -> (i32, i32) {
    %c0_i32 = arith.constant 0 : i32
    %c0_i32_0 = arith.constant 0 : i32
    %c0_i32_1 = arith.constant 0 : i32
    return %c0_i32, %c0_i32_0 : i32, i32
  }
  func.func @transform_2(%arg0: i32, %arg1: i32) -> (i32, i32) {
    %c0_i32 = arith.constant 0 : i32
    %c0_i32_0 = arith.constant 0 : i32
    %c0_i32_1 = arith.constant 0 : i32
    return %c0_i32, %c0_i32_0 : i32, i32
  }
  func.func @transform_3(%arg0: i32, %arg1: i32) -> (i32, i32) {
    %c0_i32 = arith.constant 0 : i32
    %c0_i32_0 = arith.constant 0 : i32
    return %c0_i32, %arg1 : i32, i32
  }
  func.func @transform_4(%arg0: i32, %arg1: i32) -> (i32, i32) {
    %c0_i32 = arith.constant 0 : i32
    %c0_i32_0 = arith.constant 0 : i32
    return %c0_i32, %arg1 : i32, i32
  }
  func.func @transform_5(%arg0: i32, %arg1: i32) -> (i32, i32) {
    %c0_i32 = arith.constant 0 : i32
    %c0_i32_0 = arith.constant 0 : i32
    return %arg1, %c0_i32 : i32, i32
  }
  func.func @transform_6(%arg0: i32, %arg1: i32) -> (i32, i32) {
    %c0_i32 = arith.constant 0 : i32
    %c0_i32_0 = arith.constant 0 : i32
    %c0_i32_1 = arith.constant 0 : i32
    return %c0_i32, %c0_i32_0 : i32, i32
  }
  func.func @transform_7(%arg0: i32, %arg1: i32) -> (i32, i32) {
    %c0_i32 = arith.constant 0 : i32
    %c0_i32_0 = arith.constant 0 : i32
    return %arg0, %c0_i32 : i32, i32
  }
}

</mosaic_0001>

<bundles_post_ra>
// kernel: cross_attn_block_forward.5
= control target key start
LH: loop header
LB: loop body
LE: loop exit
PB: predicated region body
PF: predicated region fallthrough
CT: control target
= control target key end

     0   :  { %vm21_vm0 = vcmask 261120   ;;  %v216_v8 = vmov 32.0   ;;  %vm178_vm14 = vcmask 523264   ;;  %s316_s0 = inlined_call_operand.vmem [shape: f32[32,32], index: 0, kind: input, shape index: {}]   ;;  %s317_s1 = inlined_call_operand.vmem [shape: f32[1,32], index: 1, kind: input, shape index: {}]   ;;  %s318_s2 = inlined_call_operand.vmem [shape: f32[1,32], index: 2, kind: input, shape index: {}]   ;;  %s319_s3 = inlined_call_operand.vmem [shape: f32[32,64], index: 3, kind: input, shape index: {}]   ;;  %s320_s4 = inlined_call_operand.vmem [shape: f32[32,64], index: 4, kind: output, shape index: {}]  }
   0x1   :  { %v19_v0 = vld [vmem:[%s316_s0 + $0x10] sm:$0xff]  ;;  %v17_v1 = vld [vmem:[%s316_s0] sm:$0xff]  ;;  %v20_v4 = vld [vmem:[%s316_s0 + $0x18] sm:$0xff]  ;;  %206 = vrcp.f32 %v216_v8 }
   0x2   :  { %v28_v2 = vsel %vm21_vm0, %v19_v0, 0.0  ;;  %v22_v3 = vsel %vm21_vm0, %v17_v1, 0.0  ;;  %v18_v5 = vld [vmem:[%s316_s0 + $0x8] sm:$0xff]  ;;  %v31_v6 = vsel %vm21_vm0, %v20_v4, 0.0  ;;  %v136_v35 = vld [vmem:[%s319_s3 + $0x18] sm:$0xff]  ;;  %v135_v36 = vld [vmem:[%s319_s3 + $0x10] sm:$0xff] }
   0x3   :  { %29 = vadd.xlane.f32.xlu0 %v28_v2  ;;  %23 = vadd.xlane.f32.xlu1 %v22_v3  ;;  %v25_v7 = vsel %vm21_vm0, %v18_v5, 0.0  ;;  %v134_v37 = vld [vmem:[%s319_s3 + $0x8] sm:$0xff]  ;;  %v133_v38 = vld [vmem:[%s319_s3] sm:$0xff] }
   0x4   :  { %161 = vmatpush.msra.mxu0 %v136_v35  ;;  %192 = vmatpush.msra.mxu2 %v136_v35  ;;  %v204_v3 = vld [vmem:[%s317_s1] ss:$0 sm:$0xff] }
   0x5   :  { %191 = vmatpush.msra.mxu1 %v136_v35  ;;  %193 = vmatpush.msra.mxu3 %v136_v35  ;;  %v205_v8 = vld [vmem:[%s318_s2] ss:$0 sm:$0xff] }
   0x6   :  { %162 = vmatpush.msra.mxu0 %v135_v36  ;;  %195 = vmatpush.msra.mxu2 %v135_v36 }
   0x7   :  { %v207_v9 = vpop.eup %206  ;;  %194 = vmatpush.msra.mxu1 %v135_v36  ;;  %196 = vmatpush.msra.mxu3 %v135_v36 }
   0x8   :  { %v35_v10 = vmul.f32 32.0, %v207_v9  ;;  %vm39_vm1 = vweird.f32 %v207_v9  ;;  %163 = vmatpush.msra.mxu0 %v134_v37  ;;  %198 = vmatpush.msra.mxu2 %v134_v37 }
   0x9   :  { %197 = vmatpush.msra.mxu1 %v134_v37  ;;  %199 = vmatpush.msra.mxu3 %v134_v37 }
   0xa   :  { %v36_v11 = vsub.f32 1.0, %v35_v10  ;;  %164 = vmatpush.msra.mxu0 %v133_v38  ;;  %201 = vmatpush.msra.mxu2 %v133_v38 }
   0xb   :  { %32 = vadd.xlane.f32.xlu0 %v31_v6  ;;  %26 = vadd.xlane.f32.xlu1 %v25_v7 }
   0xc   :  { %v37_v12 = vmul.f32 %v207_v9, %v36_v11  ;;  %200 = vmatpush.msra.mxu1 %v133_v38  ;;  %202 = vmatpush.msra.mxu3 %v133_v38 }
   0xe   :  { %v38_v13 = vadd.f32 %v207_v9, %v37_v12 }
  0x10   :  { %v40_v14 = vsel %vm39_vm1, %v207_v9, %v38_v13 }
  0x76   :  { %v30_v15 = vpop.xlane.xlu0 %29  ;;  %v24_v16 = vpop.xlane.xlu1 %23 }
  0x77   :  { %v43_v17 = vmul.f32 %v40_v14, %v30_v15  ;;  %v41_v18 = vmul.f32 %v40_v14, %v24_v16 }
  0x79   :  { %v258_v19 = vsub.f32 %v19_v0, %v43_v17  ;;  %v260_v20 = vsub.f32 %v17_v1, %v41_v18 }
  0x7b   :  { %v51_v21 = vmul.f32 %v258_v19, %v258_v19  ;;  %v49_v22 = vmul.f32 %v260_v20, %v260_v20 }
  0x7d   :  { %v59_v23 = vsel %vm21_vm0, %v51_v21, 0.0  ;;  %v53_v24 = vsel %vm21_vm0, %v49_v22, 0.0 }
  0x7e   :  { %60 = vadd.xlane.f32.xlu2 %v59_v23  ;;  %v33_v25 = vpop.xlane.xlu0 %32  ;;  %54 = vadd.xlane.f32.xlu0 %v53_v24  ;;  %v27_v26 = vpop.xlane.xlu1 %26 }
  0x7f   :  { %v44_v27 = vmul.f32 %v40_v14, %v33_v25  ;;  %v42_v28 = vmul.f32 %v40_v14, %v27_v26 }
  0x81   :  { %v268_v29 = vsub.f32 %v20_v4, %v44_v27  ;;  %v270_v30 = vsub.f32 %v18_v5, %v42_v28 }
  0x83   :  { %v52_v31 = vmul.f32 %v268_v29, %v268_v29  ;;  %v50_v32 = vmul.f32 %v270_v30, %v270_v30 }
  0x85   :  { %v62_v33 = vsel %vm21_vm0, %v52_v31, 0.0  ;;  %v56_v34 = vsel %vm21_vm0, %v50_v32, 0.0 }
  0x86   :  { %63 = vadd.xlane.f32.xlu2 %v62_v33  ;;  %57 = vadd.xlane.f32.xlu1 %v56_v34 }
  0xf1   :  { %v61_v39 = vpop.xlane.xlu2 %60  ;;  %v55_v40 = vpop.xlane.xlu0 %54 }
  0xf2   :  { %v67_v41 = vmul.f32 %v61_v39, %v40_v14  ;;  %v65_v42 = vmul.f32 %v55_v40, %v40_v14 }
  0xf4   :  { %v71_v43 = vadd.f32 1e-05, %v67_v41  ;;  %v69_v44 = vadd.f32 1e-05, %v65_v42 }
  0xf6   :  { %208 = vrsqrt.f32 %v71_v43  ;;  %vm79_vm3 = vweird.f32 %v69_v44  ;;  %vm99_vm5 = vweird.f32 %v71_v43 }
  0xf7   :  { %210 = vrsqrt.f32 %v69_v44 }
  0xf9   :  { %v64_v45 = vpop.xlane.xlu2 %63  ;;  %v58_v46 = vpop.xlane.xlu1 %57 }
  0xfa   :  { %v68_v47 = vmul.f32 %v64_v45, %v40_v14  ;;  %v66_v48 = vmul.f32 %v58_v46, %v40_v14 }
  0xfc   :  { %v209_v49 = vpop.eup %208  ;;  %v72_v50 = vadd.f32 1e-05, %v68_v47  ;;  %v70_v51 = vadd.f32 1e-05, %v66_v48 }
  0xfd   :  { %v211_v52 = vpop.eup %210  ;;  %v94_v53 = vmul.f32 %v209_v49, %v71_v43  ;;  %vm100_vm2 = vweird.f32 %v209_v49 }
  0xfe   :  { %v74_v54 = vmul.f32 %v211_v52, %v69_v44  ;;  %212 = vrsqrt.f32 %v72_v50  ;;  %vm80_vm4 = vweird.f32 %v211_v52  ;;  %vm101_vm6 = vmor %vm99_vm5, %vm100_vm2  ;;  %vm89_vm9 = vweird.f32 %v70_v51 }
  0xff   :  { %v95_v55 = vmul.f32 %v209_v49, %v94_v53  ;;  %214 = vrsqrt.f32 %v70_v51  ;;  %vm81_vm7 = vmor %vm79_vm3, %vm80_vm4  ;;  %vm109_vm11 = vweird.f32 %v72_v50 }
 0x100   :  { %v75_v56 = vmul.f32 %v211_v52, %v74_v54 }
 0x101   :  { %v96_v57 = vmul.f32 0.5, %v95_v55 }
 0x102   :  { %v76_v58 = vmul.f32 0.5, %v75_v56 }
 0x103   :  { %v97_v59 = vsub.f32 1.5, %v96_v57 }
 0x104   :  { %v213_v60 = vpop.eup %212  ;;  %v77_v61 = vsub.f32 1.5, %v76_v58 }
 0x105   :  { %v215_v62 = vpop.eup %214  ;;  %v98_v63 = vmul.f32 %v209_v49, %v97_v59  ;;  %v104_v0 = vmul.f32 %v213_v60, %v72_v50  ;;  %vm110_vm8 = vweird.f32 %v213_v60 }
 0x106   :  { %v78_v1 = vmul.f32 %v211_v52, %v77_v61  ;;  %v84_v2 = vmul.f32 %v215_v62, %v70_v51  ;;  %vm90_vm10 = vweird.f32 %v215_v62  ;;  %vm111_vm12 = vmor %vm109_vm11, %vm110_vm8 }
 0x107   :  { %v102_v4 = vsel %vm101_vm6, %v209_v49, %v98_v63  ;;  %v105_v5 = vmul.f32 %v213_v60, %v104_v0  ;;  %vm91_vm13 = vmor %vm89_vm9, %vm90_vm10 }
 0x108   :  { %v82_v6 = vsel %vm81_vm7, %v211_v52, %v78_v1  ;;  %v85_v7 = vmul.f32 %v215_v62, %v84_v2  ;;  %v115_v9 = vmul.f32 %v102_v4, %v258_v19 }
 0x109   :  { %v106_v10 = vmul.f32 0.5, %v105_v5  ;;  %v113_v11 = vmul.f32 %v82_v6, %v260_v20 }
 0x10a   :  { %v86_v12 = vmul.f32 0.5, %v85_v7  ;;  %v123_v13 = vmul.f32 %v204_v3, %v115_v9 }
 0x10b   :  { %v107_v14 = vsub.f32 1.5, %v106_v10  ;;  %v121_v15 = vmul.f32 %v204_v3, %v113_v11 }
 0x10c   :  { %v87_v16 = vsub.f32 1.5, %v86_v12  ;;  %v131_v17 = vadd.f32 %v205_v8, %v123_v13 }
 0x10d   :  { %v108_v18 = vmul.f32 %v213_v60, %v107_v14  ;;  %v129_v21 = vadd.f32 %v205_v8, %v121_v15 }
 0x10e   :  { %v88_v22 = vmul.f32 %v215_v62, %v87_v16  ;;  %189 = vmatmul.msk.f32.vlgmr.msra.gmra.mxu2 %vm21_vm0, %v131_v17 }
 0x10f   :  { %v112_v19 = vsel %vm111_vm12, %v213_v60, %v108_v18  ;;  %187 = vmatmul.msk.f32.vlgmr.msra.gmra.mxu0 %vm21_vm0, %v129_v21 }
 0x110   :  { %v92_v20 = vsel %vm91_vm13, %v215_v62, %v88_v22  ;;  %v116_v23 = vmul.f32 %v112_v19, %v268_v29 }
 0x111   :  { %v114_v24 = vmul.f32 %v92_v20, %v270_v30 }
 0x112   :  { %v124_v25 = vmul.f32 %v204_v3, %v116_v23 }
 0x113   :  { %v122_v26 = vmul.f32 %v204_v3, %v114_v24 }
 0x114   :  { %v132_v27 = vadd.f32 %v205_v8, %v124_v25 }
 0x115   :  { %v130_v28 = vadd.f32 %v205_v8, %v122_v26 }
 0x116   :  { %190 = vmatmul.msk.f32.vlgmr.msra.gmra.mxu3 %vm21_vm0, %v132_v27 }
 0x117   :  { %188 = vmatmul.msk.f32.vlgmr.msra.gmra.mxu1 %vm21_vm0, %v130_v28 }
 0x18c   :  { %v166_v31 = vpop.f32.mrf.mxu0 }
 0x18d   :  { %179 = vst.msk [vmem:[%s320_s4] sm:$0xff] %vm178_vm14, %v166_v31 }
 0x191   :  { %v172_v32 = vpop.f32.mrf.mxu2 }
 0x192   :  { %181 = vst.msk [vmem:[%s320_s4 + $0x10] sm:$0xff] %vm178_vm14, %v172_v32 }
 0x194   :  { %v169_v29 = vpop.f32.mrf.mxu1 }
 0x195   :  { %180 = vst.msk [vmem:[%s320_s4 + $0x8] sm:$0xff] %vm178_vm14, %v169_v29 }
 0x199   :  { %v175_v30 = vpop.f32.mrf.mxu3 }
 0x19a   :  { %182 = vst.msk [vmem:[%s320_s4 + $0x18] sm:$0xff] %vm178_vm14, %v175_v30 }

// kernel: cross_attn_block_forward.4
= control target key start
LH: loop header
LB: loop body
LE: loop exit
PB: predicated region body
PF: predicated region fallthrough
CT: control target
= control target key end

     0   :  { %9 = vsyncpa [#allocation3], 0  ;;  %s183_s18 = smov [#allocation2]   ;;  %s184_s20 = smov 128   ;;  %s241_s0 = inlined_call_operand.vmem [shape: f32[16,32], index: 0, kind: input, shape index: {}]   ;;  %s242_s1 = inlined_call_operand.vmem [shape: f32[1,32], index: 1, kind: input, shape index: {}]   ;;  %s243_s2 = inlined_call_operand.vmem [shape: f32[1,32], index: 2, kind: input, shape index: {}]   ;;  %s244_s3 = inlined_call_operand.hbm [shape: f32[32,32], index: 3, kind: input, shape index: {}]   ;;  %s245_s4 = inlined_call_operand.vmem [shape: f32[16,32], index: 4, kind: output, shape index: {}]  }
   0x1   :  { %s20_s17 = sshll.u32 %s244_s3, 4  ;;  %s22_s19 = sshll.u32 %s183_s18, 4  ;;  %s21_s17 = int_to_ptr.hbm [resolvable:$true] %s20_s17  ;;  %s23_s19 = int_to_ptr.vmem [resolvable:$true] %s22_s19 }
   0x2   :  { %s185_s21 = smov 8  }
   0x3   :  { %28 = dma.hbm_to_vmem [thread:$0]  %s21_s17, 512, %s23_s19, [#allocation3], %s184_s20, %s184_s20, %s185_s21  }
   0x4   :  { %181 = dma.done.wait [#allocation3], 512  }
   0x5   :  { %182 = vsyncadd [#allocation3], 4294966784  ;;  %vm35_vm0 = vcmask 261120   ;;  %v33_v0 = vld [vmem:[%s241_s0] sm:$0xff]  ;;  %v34_v2 = vld [vmem:[%s241_s0 + $0x8] sm:$0xff]  ;;  %v186_v4 = vmov 32.0  }
   0x6   :  { %v36_v1 = vsel %vm35_vm0, %v33_v0, 0.0  ;;  %v39_v3 = vsel %vm35_vm0, %v34_v2, 0.0  ;;  %151 = vrcp.f32 %v186_v4  ;;  %v102_v21 = vld [vmem:[#allocation2 + $0x18] sm:$0xff]  ;;  %v101_v22 = vld [vmem:[#allocation2 + $0x10] sm:$0xff]  ;;  %v100_v23 = vld [vmem:[#allocation2 + $0x8] sm:$0xff] }
   0x7   :  { %37 = vadd.xlane.f32.xlu0 %v36_v1  ;;  %121 = vmatpush.msra.mxu0 %v102_v21  ;;  %v99_v24 = vld [vmem:[#allocation2] sm:$0xff] }
   0x8   :  { %141 = vmatpush.msra.mxu1 %v102_v21  ;;  %v149_v39 = vld [vmem:[%s242_s1] ss:$0 sm:$0xff] }
   0x9   :  { %122 = vmatpush.msra.mxu0 %v101_v22  ;;  %v150_v43 = vld [vmem:[%s243_s2] ss:$0 sm:$0xff] }
   0xa   :  { %142 = vmatpush.msra.mxu1 %v101_v22 }
   0xb   :  { %123 = vmatpush.msra.mxu0 %v100_v23 }
   0xc   :  { %v152_v5 = vpop.eup %151  ;;  %143 = vmatpush.msra.mxu1 %v100_v23 }
   0xd   :  { %v43_v6 = vmul.f32 32.0, %v152_v5  ;;  %vm47_vm1 = vweird.f32 %v152_v5  ;;  %124 = vmatpush.msra.mxu0 %v99_v24 }
   0xe   :  { %144 = vmatpush.msra.mxu1 %v99_v24 }
   0xf   :  { %40 = vadd.xlane.f32.xlu0 %v39_v3  ;;  %v44_v7 = vsub.f32 1.0, %v43_v6 }
  0x11   :  { %v45_v8 = vmul.f32 %v152_v5, %v44_v7 }
  0x13   :  { %v46_v9 = vadd.f32 %v152_v5, %v45_v8 }
  0x15   :  { %v48_v10 = vsel %vm47_vm1, %v152_v5, %v46_v9 }
  0x7a   :  { %v38_v11 = vpop.xlane.xlu0 %37 }
  0x7b   :  { %v49_v12 = vmul.f32 %v48_v10, %v38_v11 }
  0x7d   :  { %v51_v13 = vsub.f32 %v33_v0, %v49_v12 }
  0x7f   :  { %v53_v14 = vmul.f32 %v51_v13, %v51_v13 }
  0x81   :  { %v55_v15 = vsel %vm35_vm0, %v53_v14, 0.0 }
  0x82   :  { %56 = vadd.xlane.f32.xlu1 %v55_v15  ;;  %v41_v16 = vpop.xlane.xlu0 %40 }
  0x83   :  { %v50_v17 = vmul.f32 %v48_v10, %v41_v16 }
  0x85   :  { %v52_v18 = vsub.f32 %v34_v2, %v50_v17 }
  0x87   :  { %v54_v19 = vmul.f32 %v52_v18, %v52_v18 }
  0x89   :  { %v58_v20 = vsel %vm35_vm0, %v54_v19, 0.0 }
  0x8a   :  { %59 = vadd.xlane.f32.xlu1 %v58_v20 }
  0xf5   :  { %v57_v25 = vpop.xlane.xlu1 %56 }
  0xf6   :  { %v61_v26 = vmul.f32 %v57_v25, %v48_v10 }
  0xf8   :  { %v63_v27 = vadd.f32 1e-05, %v61_v26 }
  0xfa   :  { %153 = vrsqrt.f32 %v63_v27  ;;  %vm71_vm3 = vweird.f32 %v63_v27 }
  0xfd   :  { %v60_v28 = vpop.xlane.xlu1 %59 }
  0xfe   :  { %v62_v29 = vmul.f32 %v60_v28, %v48_v10 }
 0x100   :  { %v154_v30 = vpop.eup %153  ;;  %v64_v31 = vadd.f32 1e-05, %v62_v29 }
 0x101   :  { %v66_v32 = vmul.f32 %v154_v30, %v63_v27  ;;  %vm72_vm2 = vweird.f32 %v154_v30 }
 0x102   :  { %155 = vrsqrt.f32 %v64_v31  ;;  %vm73_vm4 = vmor %vm71_vm3, %vm72_vm2  ;;  %vm81_vm6 = vweird.f32 %v64_v31 }
 0x103   :  { %v67_v33 = vmul.f32 %v154_v30, %v66_v32 }
 0x105   :  { %v68_v34 = vmul.f32 0.5, %v67_v33 }
 0x107   :  { %v69_v35 = vsub.f32 1.5, %v68_v34 }
 0x108   :  { %v156_v36 = vpop.eup %155 }
 0x109   :  { %v70_v37 = vmul.f32 %v154_v30, %v69_v35  ;;  %v76_v38 = vmul.f32 %v156_v36, %v64_v31  ;;  %vm82_vm5 = vweird.f32 %v156_v36 }
 0x10a   :  { %vm83_vm7 = vmor %vm81_vm6, %vm82_vm5 }
 0x10b   :  { %v74_v40 = vsel %vm73_vm4, %v154_v30, %v70_v37  ;;  %v77_v41 = vmul.f32 %v156_v36, %v76_v38 }
 0x10c   :  { %v85_v42 = vmul.f32 %v74_v40, %v51_v13 }
 0x10d   :  { %v78_v44 = vmul.f32 0.5, %v77_v41 }
 0x10e   :  { %v91_v45 = vmul.f32 %v149_v39, %v85_v42 }
 0x10f   :  { %v79_v46 = vsub.f32 1.5, %v78_v44 }
 0x110   :  { %v97_v47 = vadd.f32 %v150_v43, %v91_v45 }
 0x111   :  { %v80_v48 = vmul.f32 %v156_v36, %v79_v46 }
 0x112   :  { %139 = vmatmul.msk.f32.vlgmr.msra.gmra.mxu0 %vm35_vm0, %v97_v47 }
 0x113   :  { %v84_v49 = vsel %vm83_vm7, %v156_v36, %v80_v48 }
 0x114   :  { %v86_v50 = vmul.f32 %v84_v49, %v52_v18 }
 0x116   :  { %v92_v51 = vmul.f32 %v149_v39, %v86_v50 }
 0x118   :  { %v98_v52 = vadd.f32 %v150_v43, %v92_v51 }
 0x11a   :  { %140 = vmatmul.msk.f32.vlgmr.msra.gmra.mxu1 %vm35_vm0, %v98_v52 }
 0x18f   :  { %v126_v53 = vpop.f32.mrf.mxu0 }
 0x190   :  { %132 = vst.msk [vmem:[%s245_s4] sm:$0xff] %vm35_vm0, %v126_v53 }
 0x197   :  { %v129_v54 = vpop.f32.mrf.mxu1 }
 0x198   :  { %133 = vst.msk [vmem:[%s245_s4 + $0x8] sm:$0xff] %vm35_vm0, %v129_v54 }
 0x199   :  { %138 = vsyncpa [#allocation3], 1 }

// kernel: cross_attn_block_forward.6
= control target key start
LH: loop header
LB: loop body
LE: loop exit
PB: predicated region body
PF: predicated region fallthrough
CT: control target
= control target key end

     0   :  { %s866_s18 = smov 0   ;;  %s943_s0 = inlined_call_operand.vmem [shape: f32[2,8,32], index: 0, kind: input, shape index: {}]   ;;  %s944_s1 = inlined_call_operand.vmem [shape: f32[2,16,64], index: 1, kind: input, shape index: {}]   ;;  %s945_s2 = inlined_call_operand.vmem [shape: f32[2,8,32], index: 2, kind: input, shape index: {}]   ;;  %s946_s3 = inlined_call_operand.vmem [shape: f32[32,32], index: 3, kind: input, shape index: {}]   ;;  %s947_s4 = inlined_call_operand.vmem [shape: f32[1,32], index: 4, kind: input, shape index: {}]   ;;  %s948_s5 = inlined_call_operand.vmem [shape: f32[2,8,32], index: 5, kind: output, shape index: {}]  }
   0x1 LB: > { %s736_s19 = sadd.s32 4294967295, %s827_s18   ;;  %p740_p0 = scmp.ge.s32.totalorder %s827_s18, 1  ;;  %s827_s18 = sphi %s866_s18, %s15_s18  }
   0x2   : > { %p205_p1 = scmp.lt.s32.totalorder %s827_s18, 3 }
   0x4   : > { %p206_p2 = pnand %p740_p0, %p205_p1 }
   0x5   : > { %p240_p3 = scmp.lt.s32.totalorder (!%p206_p2), %s736_s19, 1  ;;  %s829_s28 = smov (!%p206_p2), 120  }
   0x6   : > { %209 = sbr.rel (%p206_p2) target bundleno = 1325 (0x52d), region = 40  ;;  %s830_s29 = smov (!%p206_p2), 112  }
   0x7   : > { %s831_s30 = smov (!%p206_p2), 96   ;;  %s832_s6 = smov (!%p206_p2), 88  }
   0x8   : > { %s833_s7 = smov (!%p206_p2), 104   ;;  %s834_s12 = smov (!%p206_p2), 80  }
   0xb   : > { %s950_s19 = smov (!%p240_p3, %s736_s19), 1  ;;  %vm270_vm0 = vcmask 64512   ;;  %vm301_vm1 = vcmask 130048   ;;  %v260_v30 = vld [vmem:[%s946_s3] sm:$0xff]  ;;  %v261_v40 = vld [vmem:[%s946_s3 + $0x8] sm:$0xff]  ;;  %vm657_vm2 = vcmask 261120  }
   0xc   : > { %s768_s20 = sshll.u32 %s950_s19, 4  ;;  %s874_s21 = sshll.u32 %s950_s19, 3  ;;  %360 = vmatpush.msra.mxu2 %v260_v30  ;;  %v804_v54 = vld [vmem:[%s947_s4] ss:$0 sm:$0xff] }
   0xd   : > { %s248_s24 = scalar_lea.vmem %s944_s1, %s768_s20  ;;  %s243_s27 = scalar_lea.vmem %s943_s0, %s874_s21 }
   0xe   : > { %v259_v0 = vld [vmem:[%s248_s24 + $0x8] sm:$0xff]  ;;  %v257_v1 = vld [vmem:[%s243_s27] sm:$0xff]  ;;  %s252_s15 = scalar_lea.vmem %s945_s2, %s874_s21  ;;  %s835_s19 = smov 72  }
   0xf   : > { %370 = vrot.lane.b32.xlu0 %v259_v0, %s829_s28  ;;  %746 = vmatpush.xpose.msk.msra.mxu0 %vm270_vm0, %v259_v0  ;;  %v258_v2 = vld [vmem:[%s248_s24] sm:$0xff]  ;;  %s256_s27 = scalar_lea.vmem %s948_s5, %s874_s21 }
  0x10   : > { %366 = vrot.lane.b32.xlu1 %v257_v1, %s829_s28  ;;  %v892_v17 = vpack.i.bf16 %v258_v2, %v259_v0  ;;  %v264_v55 = vld [vmem:[%s252_s15] sm:$0xff] }
  0x11   : > { %v269_v56 = vadd.f32 %v804_v54, %v264_v55 }
  0x13   : > { %747 = vmatpush.xpose.msk.msra.mxu0 %vm270_vm0, %v258_v2 }
  0x16   : > { %748 = vmatmul.msk.f32.vlgmr.msra.gmra.mxu0 %vm270_vm0, %v257_v1 }
  0x17   : > { %368 = vrot.lane.b32.xlu0 %v258_v2, %s829_s28 }
  0x81   : > { %v371_v3 = vpop.permute.xlu0 %370 }
  0x82   : > { %751 = vmatpush.xpose.msk.msra.mxu3 %vm270_vm0, %v371_v3  ;;  %v367_v5 = vpop.permute.xlu1 %366 }
  0x89   : > { %v369_v4 = vpop.permute.xlu0 %368 }
  0x8a   : > { %752 = vmatpush.xpose.msk.msra.mxu3 %vm270_vm0, %v369_v4 }
  0x8d   : > { %753 = vmatmul.msk.f32.vlgmr.msra.gmra.mxu3 %vm270_vm0, %v367_v5 }
  0x93   : > { %v297_v6 = vpop.f32.mrf.mxu0 }
  0x94   : > { %v300_v7 = vmul.f32 0.35355338, %v297_v6 }
  0x96   : > { %v302_v8 = vsel %vm301_vm1, %v300_v7, -inf }
  0x97   : > { %303 = vmax.xlane.f32.xlu1 %v302_v8 }
  0xb0   : > { %790 = vrot.lane.b32.xlu1 %v892_v17, %s832_s6 }
  0xb8   : > { %463 = vrot.lane.b32.xlu1 %v257_v1, %s830_s29 }
  0xc0   : > { %562 = vrot.lane.b32.xlu1 %v258_v2, %s833_s7 }
 0x10a   : > { %v304_v9 = vpop.xlane.xlu1 %303 }
 0x10b   : > { %v305_v10 = vsub.f32 %v300_v7, %v304_v9 }
 0x10d   : > { %v306_v11 = vmul.f32 1.442695, %v305_v10  ;;  %v262_v10 = vld [vmem:[%s946_s3 + $0x10] sm:$0xff] }
 0x10f   : > { %805 = vpow2.f32 %v306_v11 }
 0x110   : > { %v395_v12 = vpop.f32.mrf.mxu3 }
 0x111   : > { %v398_v13 = vmul.f32 0.35355338, %v395_v12 }
 0x113   : > { %v399_v14 = vsel %vm301_vm1, %v398_v13, -inf }
 0x114   : > { %400 = vmax.xlane.f32.xlu0 %v399_v14 }
 0x115   : > { %v806_v15 = vpop.eup %805 }
 0x116   : > { %v308_v16 = vsel %vm301_vm1, %v806_v15, 0.0 }
 0x117   : > { %309 = vadd.xlane.f32.xlu2 %v308_v16 }
 0x122   : > { %v791_v31 = vpop.permute.xlu1 %790 }
 0x123   : > { %v792_v32 = vunpack.i.l.bf16 %v791_v31  ;;  %v793_v33 = vunpack.i.h.bf16 %v791_v31 }
 0x125   : > { %433 = vmatpush.msrb.mxu2 %v792_v32 }
 0x127   : > { %434 = vmatpush.msrb.mxu2 %v793_v33 }
 0x128   : > { %467 = vrot.lane.b32.xlu0 %v259_v0, %s830_s29 }
 0x12a   : > { %v464_v36 = vpop.permute.xlu1 %463 }
 0x12f   : > { %785 = vrot.lane.b32.xlu2 %v892_v17, %s831_s30 }
 0x130   : > { %564 = vrot.lane.b32.xlu0 %v259_v0, %s833_s7 }
 0x132   : > { %v563_v42 = vpop.permute.xlu1 %562 }
 0x138   : > { %560 = vrot.lane.b32.xlu0 %v257_v1, %s833_s7 }
 0x187   : > { %v401_v18 = vpop.xlane.xlu0 %400 }
 0x188   : > { %v402_v19 = vsub.f32 %v398_v13, %v401_v18  ;;  %v263_v18 = vld [vmem:[%s946_s3 + $0x18] sm:$0xff] }
 0x18a   : > { %v403_v20 = vmul.f32 1.442695, %v402_v19  ;;  %v310_v21 = vpop.xlane.xlu2 %309 }
 0x18c   : > { %807 = vpow2.f32 %v403_v20 }
 0x18d   : > { %809 = vrcp.f32 %v310_v21 }
 0x192   : > { %v808_v22 = vpop.eup %807  ;;  %v786_v23 = vpop.permute.xlu2 %785 }
 0x193   : > { %v810_v24 = vpop.eup %809  ;;  %v405_v25 = vsel %vm301_vm1, %v808_v22, 0.0  ;;  %v787_v26 = vunpack.i.l.bf16 %v786_v23  ;;  %v788_v27 = vunpack.i.h.bf16 %v786_v23 }
 0x194   : > { %406 = vadd.xlane.f32.xlu2 %v405_v25  ;;  %v312_v28 = vmul.f32 %v810_v24, %v806_v15 }
 0x195   : > { %336 = vmatpush.msra.mxu1 %v787_v26 }
 0x197   : > { %337 = vmatpush.msra.mxu1 %v788_v27 }
 0x198   : > { %749 = vmatmul.msk.f32.vlgmr.msra.gmra.mxu1 %vm301_vm1, %v312_v28 }
 0x199   : > { %457 = vmatpush.msrb.mxu1 %v261_v40 }
 0x19a   : > { %v468_v29 = vpop.permute.xlu0 %467 }
 0x19b   : > { %756 = vmatpush.xpose.msk.msrb.mxu0 %vm270_vm0, %v468_v29 }
 0x1a2   : > { %v565_v41 = vpop.permute.xlu0 %564 }
 0x1a3   : > { %761 = vmatpush.xpose.msk.msra.mxu1 %vm270_vm0, %v565_v41 }
 0x1a7   : > { %762 = vmatpush.xpose.msk.msra.mxu1 %vm270_vm0, %v563_v42 }
 0x1aa   : > { %v561_v48 = vpop.permute.xlu0 %560 }
 0x1ac   : > { %465 = vrot.lane.b32.xlu2 %v258_v2, %s830_s29 }
 0x207   : > { %v407_v34 = vpop.xlane.xlu2 %406 }
 0x208   : > { %811 = vrcp.f32 %v407_v34 }
 0x20e   : > { %v812_v38 = vpop.eup %811 }
 0x20f   : > { %v466_v35 = vpop.permute.xlu2 %465  ;;  %v409_v39 = vmul.f32 %v812_v38, %v808_v22 }
 0x210   : > { %757 = vmatpush.xpose.msk.msrb.mxu0 %vm270_vm0, %v466_v35 }
 0x213   : > { %758 = vmatmul.msk.f32.vlgmr.msrb.gmra.mxu0 %vm270_vm0, %v464_v36 }
 0x215   : > { %v339_v37 = vpop.f32.mrf.mxu1 }
 0x216   : > { %750 = vmatmul.msk.f32.vlgmr.msra.gmra.mxu2 %vm270_vm0, %v339_v37 }
 0x217   : > { %554 = vmatpush.msra.mxu2 %v262_v10 }
 0x21e   : > { %754 = vmatmul.msk.f32.vlgmr.msrb.gmra.mxu2 %vm301_vm1, %v409_v39 }
 0x290   : > { %v492_v43 = vpop.f32.mrf.mxu0 }
 0x291   : > { %v495_v44 = vmul.f32 0.35355338, %v492_v43 }
 0x293   : > { %v496_v45 = vsel %vm301_vm1, %v495_v44, -inf }
 0x294   : > { %497 = vmax.xlane.f32.xlu1 %v496_v45 }
 0x299   : > { %v362_v46 = vpop.f32.mrf.mxu2 }
 0x29a   : > { %v365_v57 = vadd.f32 %v362_v46, %v269_v56 }
 0x2a1   : > { %v436_v47 = vpop.f32.mrf.mxu2 }
 0x2a2   : > { %755 = vmatmul.msk.f32.vlgmr.msrb.gmra.mxu1 %vm270_vm0, %v436_v47 }
 0x2aa   : > { %763 = vmatmul.msk.f32.vlgmr.msra.gmra.mxu1 %vm270_vm0, %v561_v48 }
 0x2ad   : > { %795 = vrot.lane.b32.xlu1 %v892_v17, %s834_s12 }
 0x307   : > { %v498_v49 = vpop.xlane.xlu1 %497 }
 0x308   : > { %v499_v50 = vsub.f32 %v495_v44, %v498_v49 }
 0x30a   : > { %v500_v51 = vmul.f32 1.442695, %v499_v50 }
 0x30c   : > { %813 = vpow2.f32 %v500_v51 }
 0x312   : > { %v814_v52 = vpop.eup %813 }
 0x313   : > { %v502_v53 = vsel %vm301_vm1, %v814_v52, 0.0 }
 0x314   : > { %503 = vadd.xlane.f32.xlu2 %v502_v53 }
 0x31f   : > { %v459_v58 = vpop.f32.mrf.mxu1  ;;  %v796_v63 = vpop.permute.xlu1 %795 }
 0x320   : > { %v462_v59 = vadd.f32 %v459_v58, %v365_v57  ;;  %v798_v0 = vunpack.i.h.bf16 %v796_v63  ;;  %v797_v1 = vunpack.i.l.bf16 %v796_v63 }
 0x322   : > { %530 = vmatpush.msrb.mxu3 %v797_v1 }
 0x324   : > { %531 = vmatpush.msrb.mxu3 %v798_v0 }
 0x326   : > { %651 = vmatpush.msra.mxu3 %v263_v18 }
 0x327   : > { %v589_v60 = vpop.f32.mrf.mxu1 }
 0x328   : > { %v592_v61 = vmul.f32 0.35355338, %v589_v60 }
 0x32a   : > { %v593_v62 = vsel %vm301_vm1, %v592_v61, -inf }
 0x32b   : > { %594 = vmax.xlane.f32.xlu0 %v593_v62 }
 0x32c   : > { %800 = vrot.lane.b32.xlu2 %v892_v17, %s835_s19 }
 0x387   : > { %v504_v2 = vpop.xlane.xlu2 %503 }
 0x388   : > { %815 = vrcp.f32 %v504_v2 }
 0x38e   : > { %v816_v3 = vpop.eup %815 }
 0x38f   : > { %v506_v4 = vmul.f32 %v816_v3, %v814_v52  ;;  %v801_v11 = vpop.permute.xlu2 %800 }
 0x390   : > { %v803_v12 = vunpack.i.h.bf16 %v801_v11  ;;  %v802_v13 = vunpack.i.l.bf16 %v801_v11 }
 0x391   : > { %759 = vmatmul.msk.f32.vlgmr.msrb.gmra.mxu3 %vm301_vm1, %v506_v4 }
 0x392   : > { %627 = vmatpush.msra.mxu0 %v802_v13 }
 0x394   : > { %628 = vmatpush.msra.mxu0 %v803_v12 }
 0x39e   : > { %v595_v5 = vpop.xlane.xlu0 %594 }
 0x39f   : > { %v596_v6 = vsub.f32 %v592_v61, %v595_v5 }
 0x3a1   : > { %v597_v7 = vmul.f32 1.442695, %v596_v6 }
 0x3a3   : > { %817 = vpow2.f32 %v597_v7 }
 0x3a9   : > { %v818_v8 = vpop.eup %817 }
 0x3aa   : > { %v599_v9 = vsel %vm301_vm1, %v818_v8, 0.0 }
 0x3ab   : > { %600 = vadd.xlane.f32.xlu0 %v599_v9 }
 0x414   : > { %v533_v14 = vpop.f32.mrf.mxu3 }
 0x415   : > { %760 = vmatmul.msk.f32.vlgmr.msra.gmra.mxu2 %vm270_vm0, %v533_v14 }
 0x41e   : > { %v601_v15 = vpop.xlane.xlu0 %600 }
 0x41f   : > { %819 = vrcp.f32 %v601_v15 }
 0x425   : > { %v820_v16 = vpop.eup %819 }
 0x426   : > { %v603_v17 = vmul.f32 %v820_v16, %v818_v8 }
 0x428   : > { %764 = vmatmul.msk.f32.vlgmr.msra.gmra.mxu0 %vm301_vm1, %v603_v17 }
 0x498   : > { %v556_v20 = vpop.f32.mrf.mxu2 }
 0x499   : > { %v559_v21 = vadd.f32 %v556_v20, %v462_v59 }
 0x4a5   : > { %v630_v19 = vpop.f32.mrf.mxu0 }
 0x4a6   : > { %765 = vmatmul.msk.f32.vlgmr.msra.gmra.mxu3 %vm270_vm0, %v630_v19 }
 0x529   : > { %v653_v22 = vpop.f32.mrf.mxu3 }
 0x52a   : > { %v656_v23 = vadd.f32 %v653_v22, %v559_v21 }
 0x52c   : > { %658 = vst.msk [vmem:[%s256_s27] sm:$0xff] %vm657_vm2, %v656_v23 }
 0x52d PF: > { %s15_s18 = sadd.s32 1, %s827_s18  }
 0x52e   : > { %p12_p4 = scmp.ge.s32.totalorder %s15_s18, 4  }
 0x530   :  { %14 = sbr.rel (!%p12_p4) target bundleno = 1 (0x1), region = 76 }

// kernel: cross_attn_block_forward.7
= control target key start
LH: loop header
LB: loop body
LE: loop exit
PB: predicated region body
PF: predicated region fallthrough
CT: control target
= control target key end

     0   :  { %vm39_vm0 = vcmask 261120   ;;  %s436_s0 = inlined_call_operand.vmem [shape: f32[16,32], index: 0, kind: input, shape index: {}]   ;;  %s437_s1 = inlined_call_operand.vmem [shape: f32[1,32], index: 1, kind: input, shape index: {}]   ;;  %s438_s2 = inlined_call_operand.vmem [shape: f32[1,32], index: 2, kind: input, shape index: {}]   ;;  %s439_s3 = inlined_call_operand.vmem [shape: f32[32,128], index: 3, kind: input, shape index: {}]   ;;  %s440_s4 = inlined_call_operand.vmem [shape: f32[1,128], index: 4, kind: input, shape index: {}]   ;;  %s441_s5 = inlined_call_operand.vmem [shape: f32[128,32], index: 5, kind: input, shape index: {}]   ;;  %s442_s6 = inlined_call_operand.vmem [shape: f32[1,32], index: 6, kind: input, shape index: {}]   ;;  %s443_s7 = inlined_call_operand.hbm [shape: f32[16,32], index: 7, kind: output, shape index: {}]  }
   0x1   :  { %v31_v0 = vld [vmem:[%s436_s0] sm:$0xff]  ;;  %v32_v3 = vld [vmem:[%s436_s0 + $0x8] sm:$0xff] }
   0x2   :  { %v257_v1 = vld [vmem:[%s442_s6] ss:$0 sm:$0xff]  ;;  %v42_v2 = vsel %vm39_vm0, %v31_v0, 0.0 }
   0x3   :  { %43 = vadd.xlane.f32.xlu0 %v42_v2  ;;  %v37_v4 = vadd.f32 %v257_v1, %v31_v0  ;;  %v38_v5 = vadd.f32 %v257_v1, %v32_v3 }
   0x4   :  { %12 = vsyncpa [#allocation5], 0  ;;  %v45_v6 = vsel %vm39_vm0, %v32_v3, 0.0  ;;  %v297_v7 = vmov 32.0   ;;  %v112_v24 = vld [vmem:[%s439_s3 + $0x18] sm:$0xff]  ;;  %v111_v25 = vld [vmem:[%s439_s3 + $0x10] sm:$0xff] }
   0x5   :  { %40 = vst.msk [vmem:[#allocation2] sm:$0xff] %vm39_vm0, %v37_v4  ;;  %261 = vrcp.f32 %v297_v7  ;;  %136 = vmatpush.msra.mxu0 %v112_v24  ;;  %v110_v28 = vld [vmem:[%s439_s3 + $0x8] sm:$0xff]  ;;  %v109_v30 = vld [vmem:[%s439_s3] sm:$0xff]  ;;  %v182_v36 = vld [vmem:[%s441_s5 + $0x78] sm:$0xff]  ;;  %s223_s22 = sshll.u32 %s443_s7, 4  ;;  %s299_s23 = smov 128   ;;  %s224_s22 = int_to_ptr.hbm [resolvable:$true] %s223_s22 }
   0x6   :  { %41 = vst.msk [vmem:[#allocation2 + $0x8] sm:$0xff] %vm39_vm0, %v38_v5  ;;  %v181_v37 = vld [vmem:[%s441_s5 + $0x70] sm:$0xff]  ;;  %183 = vmatpush.msra.mxu1 %v182_v36  ;;  %237 = vmatpush.msra.mxu2 %v182_v36  ;;  %v180_v39 = vld [vmem:[%s441_s5 + $0x68] sm:$0xff]  ;;  %v258_v45 = vld [vmem:[%s437_s1] ss:$0 sm:$0xff]  ;;  %s300_s24 = smov 8  }
   0x7   :  { %137 = vmatpush.msra.mxu0 %v111_v25  ;;  %v259_v48 = vld [vmem:[%s438_s2] ss:$0 sm:$0xff]  ;;  %v178_v62 = vld [vmem:[%s441_s5 + $0x58] sm:$0xff]  ;;  %v177_v63 = vld [vmem:[%s441_s5 + $0x50] sm:$0xff] }
   0x8   :  { %184 = vmatpush.msra.mxu1 %v181_v37  ;;  %238 = vmatpush.msra.mxu2 %v181_v37  ;;  %v179_v61 = vld [vmem:[%s441_s5 + $0x60] sm:$0xff]  ;;  %v174_v2 = vld [vmem:[%s441_s5 + $0x38] sm:$0xff]  ;;  %v172_v4 = vld [vmem:[%s441_s5 + $0x28] sm:$0xff] }
   0x9   :  { %138 = vmatpush.msra.mxu0 %v110_v28  ;;  %v175_v1 = vld [vmem:[%s441_s5 + $0x40] sm:$0xff]  ;;  %v169_v7 = vld [vmem:[%s441_s5 + $0x10] sm:$0xff] }
   0xa   :  { %185 = vmatpush.msra.mxu1 %v180_v39  ;;  %239 = vmatpush.msra.mxu2 %v180_v39  ;;  %v171_v5 = vld [vmem:[%s441_s5 + $0x20] sm:$0xff] }
   0xb   :  { %46 = vadd.xlane.f32.xlu0 %v45_v6  ;;  %v262_v8 = vpop.eup %261  ;;  %139 = vmatpush.msra.mxu0 %v109_v30  ;;  %v170_v6 = vld [vmem:[%s441_s5 + $0x18] sm:$0xff] }
   0xc   :  { %v49_v9 = vmul.f32 32.0, %v262_v8  ;;  %vm53_vm1 = vweird.f32 %v262_v8  ;;  %186 = vmatpush.msra.mxu1 %v179_v61  ;;  %240 = vmatpush.msra.mxu2 %v179_v61 }
   0xd   :  { %v166_v37 = vld [vmem:[#allocation2 + $0x8] sm:$0xff] }
   0xe   :  { %v50_v10 = vsub.f32 1.0, %v49_v9  ;;  %187 = vmatpush.msra.mxu1 %v178_v62  ;;  %241 = vmatpush.msra.mxu2 %v178_v62  ;;  %v167_v9 = vld [vmem:[%s441_s5] sm:$0xff] }
  0x10   :  { %v51_v11 = vmul.f32 %v262_v8, %v50_v10  ;;  %188 = vmatpush.msra.mxu1 %v177_v63  ;;  %242 = vmatpush.msra.mxu2 %v177_v63  ;;  %v260_v10 = vld [vmem:[%s440_s4] ss:$0 sm:$0xff]  ;;  %s298_s4 = smov [#allocation4]  }
  0x12   :  { %v52_v12 = vadd.f32 %v262_v8, %v51_v11 }
  0x14   :  { %v54_v13 = vsel %vm53_vm1, %v262_v8, %v52_v12  ;;  %v168_v8 = vld [vmem:[%s441_s5 + $0x8] sm:$0xff] }
  0x76   :  { %v44_v14 = vpop.xlane.xlu0 %43 }
  0x77   :  { %v55_v15 = vmul.f32 %v54_v13, %v44_v14 }
  0x79   :  { %v57_v16 = vsub.f32 %v31_v0, %v55_v15  ;;  %v176_v0 = vld [vmem:[%s441_s5 + $0x48] sm:$0xff] }
  0x7a   :  { %189 = vmatpush.msra.mxu1 %v176_v0  ;;  %243 = vmatpush.msra.mxu2 %v176_v0 }
  0x7b   :  { %v59_v17 = vmul.f32 %v57_v16, %v57_v16 }
  0x7c   :  { %190 = vmatpush.msra.mxu1 %v175_v1  ;;  %244 = vmatpush.msra.mxu2 %v175_v1 }
  0x7d   :  { %v61_v18 = vsel %vm39_vm0, %v59_v17, 0.0 }
  0x7e   :  { %62 = vadd.xlane.f32.xlu1 %v61_v18  ;;  %v47_v19 = vpop.xlane.xlu0 %46  ;;  %191 = vmatpush.msra.mxu1 %v174_v2 }
  0x7f   :  { %v56_v20 = vmul.f32 %v54_v13, %v47_v19  ;;  %245 = vmatpush.msra.mxu2 %v174_v2 }
  0x81   :  { %v58_v21 = vsub.f32 %v32_v3, %v56_v20  ;;  %v173_v3 = vld [vmem:[%s441_s5 + $0x30] sm:$0xff]  ;;  %s221_s5 = sshll.u32 %s298_s4, 4  ;;  %s222_s5 = int_to_ptr.vmem [resolvable:$true] %s221_s5 }
  0x82   :  { %192 = vmatpush.msra.mxu1 %v173_v3  ;;  %246 = vmatpush.msra.mxu2 %v173_v3 }
  0x83   :  { %v60_v22 = vmul.f32 %v58_v21, %v58_v21 }
  0x84   :  { %193 = vmatpush.msra.mxu1 %v172_v4  ;;  %247 = vmatpush.msra.mxu2 %v172_v4 }
  0x85   :  { %v64_v23 = vsel %vm39_vm0, %v60_v22, 0.0 }
  0x86   :  { %65 = vadd.xlane.f32.xlu1 %v64_v23  ;;  %194 = vmatpush.msra.mxu1 %v171_v5 }
  0x87   :  { %248 = vmatpush.msra.mxu2 %v171_v5 }
  0x88   :  { %195 = vmatpush.msra.mxu1 %v170_v6 }
  0x89   :  { %249 = vmatpush.msra.mxu2 %v170_v6 }
  0x8a   :  { %196 = vmatpush.msra.mxu1 %v169_v7 }
  0x8b   :  { %250 = vmatpush.msra.mxu2 %v169_v7 }
  0x8c   :  { %197 = vmatpush.msra.mxu1 %v168_v8 }
  0x8d   :  { %251 = vmatpush.msra.mxu2 %v168_v8 }
  0x8e   :  { %198 = vmatpush.msra.mxu1 %v167_v9 }
  0x8f   :  { %252 = vmatpush.msra.mxu2 %v167_v9 }
  0xf1   :  { %v63_v26 = vpop.xlane.xlu1 %62 }
  0xf2   :  { %v67_v27 = vmul.f32 %v63_v26, %v54_v13 }
  0xf4   :  { %v69_v29 = vadd.f32 1e-05, %v67_v27 }
  0xf6   :  { %263 = vrsqrt.f32 %v69_v29  ;;  %vm77_vm3 = vweird.f32 %v69_v29 }
  0xf9   :  { %v66_v31 = vpop.xlane.xlu1 %65 }
  0xfa   :  { %v68_v32 = vmul.f32 %v66_v31, %v54_v13 }
  0xfc   :  { %v264_v33 = vpop.eup %263  ;;  %v70_v34 = vadd.f32 1e-05, %v68_v32 }
  0xfd   :  { %v72_v35 = vmul.f32 %v264_v33, %v69_v29  ;;  %vm78_vm2 = vweird.f32 %v264_v33 }
  0xfe   :  { %265 = vrsqrt.f32 %v70_v34  ;;  %vm79_vm4 = vmor %vm77_vm3, %vm78_vm2  ;;  %vm87_vm6 = vweird.f32 %v70_v34 }
  0xff   :  { %v73_v38 = vmul.f32 %v264_v33, %v72_v35 }
 0x101   :  { %v74_v40 = vmul.f32 0.5, %v73_v38 }
 0x103   :  { %v75_v41 = vsub.f32 1.5, %v74_v40 }
 0x104   :  { %v266_v42 = vpop.eup %265 }
 0x105   :  { %v76_v43 = vmul.f32 %v264_v33, %v75_v41  ;;  %v82_v44 = vmul.f32 %v266_v42, %v70_v34  ;;  %vm88_vm5 = vweird.f32 %v266_v42 }
 0x106   :  { %vm89_vm7 = vmor %vm87_vm6, %vm88_vm5 }
 0x107   :  { %v80_v46 = vsel %vm79_vm4, %v264_v33, %v76_v43  ;;  %v83_v47 = vmul.f32 %v266_v42, %v82_v44  ;;  %v165_v33 = vld [vmem:[#allocation2] sm:$0xff] }
 0x108   :  { %v91_v49 = vmul.f32 %v80_v46, %v57_v16 }
 0x109   :  { %v84_v50 = vmul.f32 0.5, %v83_v47 }
 0x10a   :  { %v97_v51 = vmul.f32 %v258_v45, %v91_v49 }
 0x10b   :  { %v85_v52 = vsub.f32 1.5, %v84_v50 }
 0x10c   :  { %v103_v53 = vadd.f32 %v259_v48, %v97_v51 }
 0x10d   :  { %v86_v54 = vmul.f32 %v266_v42, %v85_v52 }
 0x10e   :  { %105 = vst.msk [vmem:[#allocation3] sm:$0xff] %vm39_vm0, %v103_v53 }
 0x10f   :  { %v90_v55 = vsel %vm89_vm7, %v266_v42, %v86_v54 }
 0x110   :  { %v92_v56 = vmul.f32 %v90_v55, %v58_v21 }
 0x112   :  { %v98_v57 = vmul.f32 %v258_v45, %v92_v56 }
 0x114   :  { %v104_v58 = vadd.f32 %v259_v48, %v98_v57 }
 0x115   :  { %v107_v59 = vld [vmem:[#allocation3] sm:$0xff] }
 0x116   :  { %106 = vst.msk [vmem:[#allocation3 + $0x8] sm:$0xff] %vm39_vm0, %v104_v58  ;;  %235 = vmatmul.msk.f32.vlgmr.msra.gmra.mxu0 %vm39_vm0, %v107_v59 }
 0x11d   :  { %v108_v60 = vld [vmem:[#allocation3 + $0x8] sm:$0xff] }
 0x11e   :  { %236 = vmatmul.msk.f32.gmra.mxu0 %vm39_vm0, %v108_v60 }
 0x193   :  { %v141_v11 = vpop.f32.mrf.mxu0 }
 0x194   :  { %v142_v12 = vadd.f32 %v260_v10, %v141_v11 }
 0x196   :  { %v147_v13 = vmul.f32 %v142_v12, %v142_v12 }
 0x198   :  { %v149_v14 = vmul.f32 %v147_v13, %v142_v12 }
 0x19a   :  { %v151_v15 = vmul.f32 0.044715, %v149_v14 }
 0x19b   :  { %v144_v16 = vpop.f32.mrf.mxu0 }
 0x19c   :  { %v145_v17 = vadd.f32 %v260_v10, %v144_v16  ;;  %v153_v18 = vadd.f32 %v151_v15, %v142_v12 }
 0x19e   :  { %v148_v19 = vmul.f32 %v145_v17, %v145_v17  ;;  %v155_v20 = vmul.f32 0.7978846, %v153_v18 }
 0x1a0   :  { %v150_v21 = vmul.f32 %v148_v19, %v145_v17  ;;  %267 = vtanh.f32 %v155_v20 }
 0x1a2   :  { %v152_v22 = vmul.f32 0.044715, %v150_v21 }
 0x1a4   :  { %v154_v23 = vadd.f32 %v152_v22, %v145_v17 }
 0x1a6   :  { %v268_v24 = vpop.eup %267  ;;  %v156_v25 = vmul.f32 0.7978846, %v154_v23 }
 0x1a7   :  { %v159_v26 = vadd.f32 1.0, %v268_v24 }
 0x1a8   :  { %269 = vtanh.f32 %v156_v25 }
 0x1a9   :  { %v161_v27 = vmul.f32 0.5, %v159_v26 }
 0x1ab   :  { %v163_v28 = vmul.f32 %v161_v27, %v142_v12 }
 0x1ad   :  { %199 = vmatmul.f32.vlgmr.msra.gmra.mxu1 %v163_v28 }
 0x1ae   :  { %v270_v29 = vpop.eup %269 }
 0x1af   :  { %v160_v30 = vadd.f32 1.0, %v270_v29 }
 0x1b1   :  { %v162_v31 = vmul.f32 0.5, %v160_v30 }
 0x1b3   :  { %v164_v32 = vmul.f32 %v162_v31, %v145_v17 }
 0x1b5   :  { %202 = vmatmul.f32.vlgmr.msra.gmra.mxu2 %v164_v32 }
 0x22a   :  { %v200_v34 = vpop.f32.mrf.mxu1 }
 0x22b   :  { %v206_v35 = vadd.f32 %v200_v34, %v165_v33 }
 0x22d   :  { %208 = vst.msk [vmem:[#allocation2] sm:$0xff] %vm39_vm0, %v206_v35 }
 0x234   :  { %v213_v36 = vld [vmem:[#allocation2] sm:$0xff] }
 0x235   :  { %215 = vst.msk [vmem:[#allocation4] sm:$0xff] %vm39_vm0, %v213_v36 }
 0x238   :  { %v203_v38 = vpop.f32.mrf.mxu2 }
 0x239   :  { %v207_v39 = vadd.f32 %v203_v38, %v166_v37 }
 0x23b   :  { %209 = vst.msk [vmem:[#allocation2 + $0x8] sm:$0xff] %vm39_vm0, %v207_v39 }
 0x242   :  { %v214_v40 = vld [vmem:[#allocation2 + $0x8] sm:$0xff] }
 0x243   :  { %216 = vst.msk [vmem:[#allocation4 + $0x8] sm:$0xff] %vm39_vm0, %v214_v40 }
 0x244   :  { %229 = dma.vmem_to_hbm [thread:$0]  %s222_s5, 256, %s224_s22, [#allocation5], %s299_s23, %s299_s23, %s300_s24  }
 0x245   :  { %295 = dma.done.wait [#allocation5], 256  }
 0x246   :  { %296 = vsyncadd [#allocation5], 4294967040 }
 0x247   :  { %234 = vsyncpa [#allocation5], 1 }

</bundles_post_ra>
